<compile_context>
chip_gen: v6e
topology: v6e:2x2x1
jax: 0.10.0
libtpu: 0.0.40
codegen_flags: <defaults>
</compile_context>

<pallas_src>
import functools
import math

import jax
import jax.numpy as jnp
from jax.experimental import pallas as pl
from jax.experimental.pallas import tpu as pltpu


def _round_up(x, m):
    return ((x + m - 1) // m) * m


# ----------------------------- Pallas kernel ------------------------------ #

def _s2d_conv_kernel(x_ref, w_ref, b_ref, *o_refs, ws, n_rows):
    """2x2/stride-1 conv on a space-to-depth plane == 4 accumulated matmuls.

    x_ref     : (1, Hs*Ws, 4*Cin)  bf16  flattened s2d plane of one batch elem
    w_ref     : (2, 2, 4*Cin, tco) bf16  s2d-repacked conv weight (one cout blk)
    b_ref     : (1, tco)           f32
    o_refs[0] : (1, n_rows, tco)   f32   conv output, n_rows = Ho*Ws flat rows
    o_refs[1] : (1, n_rows, tco)   bf16  (optional) fused relu(out) in bf16
    """
    acc = None
    for p in range(2):          # window row offset
        for q in range(2):      # window col offset
            start = p * ws + q                              # static Python int
            tap = x_ref[0, start:start + n_rows, :]         # (n_rows, 4*Cin)
            part = jnp.dot(tap, w_ref[p, q],
                           preferred_element_type=jnp.float32)
            acc = part if acc is None else acc + part
    y = acc + b_ref[...]                                     # f32 (n_rows, tco)
    o_refs[0][0] = y.astype(o_refs[0].dtype)
    if len(o_refs) == 2:
        # ReLU in f32 (works on v5e's f32-only VPU), then cast to bf16.
        o_refs[1][0] = jnp.maximum(y, 0.0).astype(o_refs[1].dtype)


# ------------------------------- JAX glue ---------------------------------- #

def conv3x3_s2_p1_nhwc(x_nhwc, w_oihw, bias, *, emit_relu_bf16=False):
    """Conv2d(kernel=3, stride=2, pad=1) on NHWC input via a Pallas kernel.

    `x_nhwc` may carry more (lane-padding) channels than `w_oihw` expects; the
    extra channels are treated as zeros (used to chain the lane-padded p6
    output straight into p7 without slicing lanes).

    Returns a (B, Ho, Wo, Coutp) f32 array whose lanes >= Cout are zero; if
    `emit_relu_bf16`, additionally returns relu(out) in bf16 with the same
    shape (produced inside the kernel, no extra XLA pass).
    """
    B, H, W, Cx = x_nhwc.shape
    Cout, Cin = w_oihw.shape[0], w_oihw.shape[1]
    assert Cin <= Cx

    Ho = (H - 1) // 2 + 1
    Wo = (W - 1) // 2 + 1
    Ws = Wo + 1                       # s2d columns (one garbage col per row)
    Hs = Ho + 2                       # s2d rows incl. zero border/overread row
    Coutp = _round_up(Cout, 128)      # lane-dense output stores
    tco = 128                         # cout tile -> >=2 grid steps if Cout>128
    n_co = Coutp // tco
    C4 = 4 * Cx
    n_rows = Ho * Ws                  # flat output rows produced per step

    # ---- input: (maybe cast to bf16) -> zero-pad -> space-to-depth ---------
    x = x_nhwc
    if x.dtype != jnp.bfloat16:
        x = x.astype(jnp.bfloat16)
    Hp2, Wp2 = 2 * Hs, 2 * Ws
    x = jnp.pad(x, ((0, 0), (1, Hp2 - 1 - H), (1, Wp2 - 1 - W), (0, 0)))
    x = x.reshape(B, Hs, 2, Ws, 2, Cx)             # (b, R, u, C, v, cin)
    x = x.transpose(0, 1, 3, 2, 4, 5)              # (b, R, C, u, v, cin)
    x = x.reshape(B, Hs * Ws, C4)                  # flattened s2d plane

    # ---- weight: (Cout, Cin, 3, 3) -> (2, 2, 4*Cx, Coutp), bf16 ------------
    w = w_oihw
    if Cx > Cin:                                   # zero-extend input channels
        w = jnp.pad(w, ((0, 0), (0, Cx - Cin), (0, 0), (0, 0)))
    wt = jnp.transpose(w, (2, 3, 1, 0))                       # (3, 3, Cx, Cout)
    wt = jnp.pad(wt, ((0, 1), (0, 1), (0, 0), (0, Coutp - Cout)))
    w4 = wt.reshape(2, 2, 2, 2, Cx, Coutp)                    # (p, u, q, v, ci, co)
    w4 = w4.transpose(0, 2, 1, 3, 4, 5).reshape(2, 2, C4, Coutp)
    w4 = w4.astype(jnp.bfloat16)

    b2 = jnp.pad(bias, (0, Coutp - Cout)).reshape(1, Coutp).astype(jnp.float32)

    kernel = functools.partial(_s2d_conv_kernel, ws=Ws, n_rows=n_rows)

    o_spec = pl.BlockSpec((1, n_rows, tco), lambda b, j: (b, 0, j))
    if emit_relu_bf16:
        out_shape = (jax.ShapeDtypeStruct((B, n_rows, Coutp), jnp.float32),
                     jax.ShapeDtypeStruct((B, n_rows, Coutp), jnp.bfloat16))
        out_specs = (o_spec, o_spec)
    else:
        out_shape = jax.ShapeDtypeStruct((B, n_rows, Coutp), jnp.float32)
        out_specs = o_spec

    flops = 8 * B * n_rows * C4 * Coutp            # 4 taps * 2*M*K*N
    out_bytes = B * n_rows * Coutp * (4 + (2 if emit_relu_bf16 else 0))
    bytes_accessed = x.size * 2 + w4.size * 2 + b2.size * 4 + out_bytes

    result = pl.pallas_call(
        kernel,
        out_shape=out_shape,
        grid=(B, n_co),
        in_specs=[
            # Full s2d plane of batch b; block index is constant over the
            # inner cout axis, so Pallas DMAs it only once per batch element.
            pl.BlockSpec((1, Hs * Ws, C4), lambda b, j: (b, 0, 0)),
            # TODO(synk): single-buffer these grid-invariant blocks
            # (pl.Buffered(1)) and add a K (4*Cin) grid axis if much larger
            # channel counts ever push per-step VMEM past v7x's budget.
            pl.BlockSpec((2, 2, C4, tco), lambda b, j: (0, 0, 0, j)),
            pl.BlockSpec((1, tco), lambda b, j: (0, j)),
        ],
        out_specs=out_specs,
        compiler_params=pltpu.CompilerParams(
            dimension_semantics=("parallel", "parallel"),
            vmem_limit_bytes=32 * 1024 * 1024),
        cost_estimate=pl.CostEstimate(
            flops=flops, transcendentals=0, bytes_accessed=bytes_accessed),
    )(x, w4, b2)

    outs = result if emit_relu_bf16 else (result,)
    # Drop the per-row garbage column; keep lane padding for chaining.
    outs = tuple(o.reshape(B, Ho, Ws, Coutp)[:, :, :Wo, :] for o in outs)
    return outs if emit_relu_bf16 else outs[0]


class LastLevelP6P7:
    """JAX/Pallas port of ever.module.fpn.LastLevelP6P7 (forward pass)."""

    def __init__(self, in_channels, out_channels, key):
        k6, k7 = jax.random.split(key)
        # kaiming_uniform_(a=1): gain = sqrt(2/(1+1)) = 1, bound = sqrt(3/fan_in)
        bound6 = math.sqrt(3.0 / (in_channels * 9))
        bound7 = math.sqrt(3.0 / (out_channels * 9))
        self.w6 = jax.random.uniform(k6, (out_channels, in_channels, 3, 3),
                                     jnp.float32, -bound6, bound6)
        self.b6 = jnp.zeros((out_channels,), jnp.float32)
        self.w7 = jax.random.uniform(k7, (out_channels, out_channels, 3, 3),
                                     jnp.float32, -bound7, bound7)
        self.b7 = jnp.zeros((out_channels,), jnp.float32)
        self.out_channels = out_channels
        self.use_P5 = in_channels == out_channels

    def __call__(self, c5, p5):
        x = p5 if self.use_P5 else c5                  # NCHW, f32
        x_nhwc = jnp.transpose(x, (0, 2, 3, 1))
        # p6 (f32) and its fused relu/bf16 copy come out of one kernel, both
        # in lane-padded NHWC; relu(p6) feeds p7 directly without any extra
        # XLA elementwise/cast pass.  Only the two final outputs go to NCHW.
        p6_full, p6_relu_bf16 = conv3x3_s2_p1_nhwc(
            x_nhwc, self.w6, self.b6, emit_relu_bf16=True)
        p7_full = conv3x3_s2_p1_nhwc(p6_relu_bf16, self.w7, self.b7)
        co = self.out_channels
        p6 = jnp.transpose(p6_full[..., :co], (0, 3, 1, 2))
        p7 = jnp.transpose(p7_full[..., :co], (0, 3, 1, 2))
        return [p6, p7]


# ------------------------------ reference ---------------------------------- #

def _conv_ref(x, w, b):
    # bf16 operands / f32 accumulation, mirroring the kernel's numerics.
    out = jax.lax.conv_general_dilated(
        x.astype(jnp.bfloat16), w.astype(jnp.bfloat16),
        window_strides=(2, 2), padding=((1, 1), (1, 1)),
        dimension_numbers=("NCHW", "OIHW", "NCHW"),
        preferred_element_type=jnp.float32)
    return out + b.reshape(1, -1, 1, 1)


if __name__ == "__main__":
    key = jax.random.PRNGKey(0)
    k_c5, k_p5, k_param = jax.random.split(key, 3)

    B, Cin, Cout, H, W = 2, 8, 4, 16, 16
    c5 = jax.random.normal(k_c5, (B, Cin, H, W), jnp.float32)
    p5 = jax.random.normal(k_p5, (B, Cout, H, W), jnp.float32)

    module = LastLevelP6P7(Cin, Cout, k_param)
    fwd = jax.jit(lambda a, b: module(a, b))
    p6, p7 = fwd(c5, p5)
    p6 = jax.block_until_ready(p6)
    p7 = jax.block_until_ready(p7)

    assert p6.shape == (B, Cout, H // 2, W // 2), p6.shape
    assert p7.shape == (B, Cout, H // 4, W // 4), p7.shape

    # Numerical check against XLA's conv with matching bf16/f32 numerics.
    x_in = p5 if module.use_P5 else c5
    p6_ref = _conv_ref(x_in, module.w6, module.b6)
    p7_ref = _conv_ref(jnp.maximum(p6_ref, 0.0), module.w7, module.b7)
    err6 = float(jnp.max(jnp.abs(p6 - p6_ref)))
    err7 = float(jnp.max(jnp.abs(p7 - p7_ref)))
    assert err6 < 5e-2, err6
    assert err7 < 5e-2, err7

    print("KERNEL_OK")
</pallas_src>

<mosaic_0001>
module attributes {stable_mosaic.version = 11 : i64} {
  func.func @_s2d_conv_kernel(%arg0: i32, %arg1: i32, %arg2: memref<1x90x32xbf16, #tpu.memory_space<vmem>>, %arg3: memref<2x2x32x128xbf16, #tpu.memory_space<vmem>>, %arg4: memref<1x128xf32, #tpu.memory_space<vmem>>, %arg5: memref<1x72x128xf32, #tpu.memory_space<vmem>>, %arg6: memref<1x72x128xbf16, #tpu.memory_space<vmem>>) attributes {dimension_semantics = [#tpu.dimension_semantics<parallel>, #tpu.dimension_semantics<parallel>], iteration_bounds = array<i64: 2, 1>, scalar_prefetch = 0 : i64, scratch_operands = 0 : i64, tpu.core_type = #tpu.core_type<tc>, window_params = [{transform_indices = @transform_0, window_bounds = array<i64: 1, 90, 32>}, {transform_indices = @transform_1, window_bounds = array<i64: 2, 2, 32, 128>}, {transform_indices = @transform_2, window_bounds = array<i64: 1, 128>}, {transform_indices = @transform_3, window_bounds = array<i64: 1, 72, 128>}, {transform_indices = @transform_4, window_bounds = array<i64: 1, 72, 128>}]} {
    %c0 = arith.constant 0 : index
    %c0_0 = arith.constant 0 : index
    %c0_1 = arith.constant 0 : index
    %0 = vector.load %arg2[%c0, %c0_0, %c0_1] : memref<1x90x32xbf16, #tpu.memory_space<vmem>>, vector<1x72x32xbf16>
    %1 = vector.shape_cast %0 : vector<1x72x32xbf16> to vector<72x32xbf16>
    %c0_2 = arith.constant 0 : index
    %c0_3 = arith.constant 0 : index
    %c0_4 = arith.constant 0 : index
    %c0_5 = arith.constant 0 : index
    %2 = vector.load %arg3[%c0_2, %c0_3, %c0_4, %c0_5] : memref<2x2x32x128xbf16, #tpu.memory_space<vmem>>, vector<1x1x32x128xbf16>
    %3 = vector.shape_cast %2 : vector<1x1x32x128xbf16> to vector<32x128xbf16>
    %cst = arith.constant dense<0.000000e+00> : vector<72x128xf32>
    %4 = tpu.matmul %1, %3, %cst {dimension_numbers = #tpu.dot_dimension_numbers<[1], [0], [0], [1], [0, 0, 1, 1], [], []>} : vector<72x32xbf16>, vector<32x128xbf16>, vector<72x128xf32> -> vector<72x128xf32>
    %c0_6 = arith.constant 0 : index
    %c1 = arith.constant 1 : index
    %c0_7 = arith.constant 0 : index
    %5 = vector.load %arg2[%c0_6, %c1, %c0_7] : memref<1x90x32xbf16, #tpu.memory_space<vmem>>, vector<1x72x32xbf16>
    %6 = vector.shape_cast %5 : vector<1x72x32xbf16> to vector<72x32xbf16>
    %c0_8 = arith.constant 0 : index
    %c1_9 = arith.constant 1 : index
    %c0_10 = arith.constant 0 : index
    %c0_11 = arith.constant 0 : index
    %7 = vector.load %arg3[%c0_8, %c1_9, %c0_10, %c0_11] : memref<2x2x32x128xbf16, #tpu.memory_space<vmem>>, vector<1x1x32x128xbf16>
    %8 = vector.shape_cast %7 : vector<1x1x32x128xbf16> to vector<32x128xbf16>
    %cst_12 = arith.constant dense<0.000000e+00> : vector<72x128xf32>
    %9 = tpu.matmul %6, %8, %cst_12 {dimension_numbers = #tpu.dot_dimension_numbers<[1], [0], [0], [1], [0, 0, 1, 1], [], []>} : vector<72x32xbf16>, vector<32x128xbf16>, vector<72x128xf32> -> vector<72x128xf32>
    %10 = arith.addf %4, %9 : vector<72x128xf32>
    %c0_13 = arith.constant 0 : index
    %c9 = arith.constant 9 : index
    %c0_14 = arith.constant 0 : index
    %11 = vector.load %arg2[%c0_13, %c9, %c0_14] : memref<1x90x32xbf16, #tpu.memory_space<vmem>>, vector<1x72x32xbf16>
    %12 = vector.shape_cast %11 : vector<1x72x32xbf16> to vector<72x32xbf16>
    %c1_15 = arith.constant 1 : index
    %c0_16 = arith.constant 0 : index
    %c0_17 = arith.constant 0 : index
    %c0_18 = arith.constant 0 : index
    %13 = vector.load %arg3[%c1_15, %c0_16, %c0_17, %c0_18] : memref<2x2x32x128xbf16, #tpu.memory_space<vmem>>, vector<1x1x32x128xbf16>
    %14 = vector.shape_cast %13 : vector<1x1x32x128xbf16> to vector<32x128xbf16>
    %cst_19 = arith.constant dense<0.000000e+00> : vector<72x128xf32>
    %15 = tpu.matmul %12, %14, %cst_19 {dimension_numbers = #tpu.dot_dimension_numbers<[1], [0], [0], [1], [0, 0, 1, 1], [], []>} : vector<72x32xbf16>, vector<32x128xbf16>, vector<72x128xf32> -> vector<72x128xf32>
    %16 = arith.addf %10, %15 : vector<72x128xf32>
    %c0_20 = arith.constant 0 : index
    %c10 = arith.constant 10 : index
    %c0_21 = arith.constant 0 : index
    %17 = vector.load %arg2[%c0_20, %c10, %c0_21] : memref<1x90x32xbf16, #tpu.memory_space<vmem>>, vector<1x72x32xbf16>
    %18 = vector.shape_cast %17 : vector<1x72x32xbf16> to vector<72x32xbf16>
    %c1_22 = arith.constant 1 : index
    %c1_23 = arith.constant 1 : index
    %c0_24 = arith.constant 0 : index
    %c0_25 = arith.constant 0 : index
    %19 = vector.load %arg3[%c1_22, %c1_23, %c0_24, %c0_25] : memref<2x2x32x128xbf16, #tpu.memory_space<vmem>>, vector<1x1x32x128xbf16>
    %20 = vector.shape_cast %19 : vector<1x1x32x128xbf16> to vector<32x128xbf16>
    %cst_26 = arith.constant dense<0.000000e+00> : vector<72x128xf32>
    %21 = tpu.matmul %18, %20, %cst_26 {dimension_numbers = #tpu.dot_dimension_numbers<[1], [0], [0], [1], [0, 0, 1, 1], [], []>} : vector<72x32xbf16>, vector<32x128xbf16>, vector<72x128xf32> -> vector<72x128xf32>
    %22 = arith.addf %16, %21 : vector<72x128xf32>
    %c0_27 = arith.constant 0 : index
    %c0_28 = arith.constant 0 : index
    %23 = vector.load %arg4[%c0_27, %c0_28] : memref<1x128xf32, #tpu.memory_space<vmem>>, vector<1x128xf32>
    %24 = vector.broadcast %23 : vector<1x128xf32> to vector<72x128xf32>
    %25 = arith.addf %22, %24 : vector<72x128xf32>
    %c0_29 = arith.constant 0 : index
    %c0_30 = arith.constant 0 : index
    %c0_31 = arith.constant 0 : index
    %26 = vector.load %arg5[%c0_29, %c0_30, %c0_31] : memref<1x72x128xf32, #tpu.memory_space<vmem>>, vector<1x72x128xf32>
    %27 = vector.shape_cast %26 : vector<1x72x128xf32> to vector<72x128xf32>
    %28 = vector.shape_cast %25 : vector<72x128xf32> to vector<1x72x128xf32>
    tpu.vector_store %arg5[%c0_29, %c0_30, %c0_31], %28 {strides = array<i32>} : memref<1x72x128xf32, #tpu.memory_space<vmem>>, vector<1x72x128xf32>,
    %cst_32 = arith.constant 0.000000e+00 : f32
    %29 = vector.broadcast %cst_32 : f32 to vector<72x128xf32>
    %30 = arith.maximumf %25, %29 : vector<72x128xf32>
    %31 = arith.truncf %30 : vector<72x128xf32> to vector<72x128xbf16>
    %c0_33 = arith.constant 0 : index
    %c0_34 = arith.constant 0 : index
    %c0_35 = arith.constant 0 : index
    %32 = vector.load %arg6[%c0_33, %c0_34, %c0_35] : memref<1x72x128xbf16, #tpu.memory_space<vmem>>, vector<1x72x128xbf16>
    %33 = vector.shape_cast %32 : vector<1x72x128xbf16> to vector<72x128xbf16>
    %34 = vector.shape_cast %31 : vector<72x128xbf16> to vector<1x72x128xbf16>
    tpu.vector_store %arg6[%c0_33, %c0_34, %c0_35], %34 {strides = array<i32>} : memref<1x72x128xbf16, #tpu.memory_space<vmem>>, vector<1x72x128xbf16>,
    return
  }
  func.func @transform_0(%arg0: i32, %arg1: i32) -> (i32, i32, i32) {
    %c0_i32 = arith.constant 0 : i32
    %c0_i32_0 = arith.constant 0 : i32
    %c0_i32_1 = arith.constant 0 : i32
    return %arg0, %c0_i32, %c0_i32_0 : i32, i32, i32
  }
  func.func @transform_1(%arg0: i32, %arg1: i32) -> (i32, i32, i32, i32) {
    %c0_i32 = arith.constant 0 : i32
    %c0_i32_0 = arith.constant 0 : i32
    %c0_i32_1 = arith.constant 0 : i32
    %c0_i32_2 = arith.constant 0 : i32
    return %c0_i32, %c0_i32_0, %c0_i32_1, %arg1 : i32, i32, i32, i32
  }
  func.func @transform_2(%arg0: i32, %arg1: i32) -> (i32, i32) {
    %c0_i32 = arith.constant 0 : i32
    %c0_i32_0 = arith.constant 0 : i32
    return %c0_i32, %arg1 : i32, i32
  }
  func.func @transform_3(%arg0: i32, %arg1: i32) -> (i32, i32, i32) {
    %c0_i32 = arith.constant 0 : i32
    %c0_i32_0 = arith.constant 0 : i32
    return %arg0, %c0_i32, %arg1 : i32, i32, i32
  }
  func.func @transform_4(%arg0: i32, %arg1: i32) -> (i32, i32, i32) {
    %c0_i32 = arith.constant 0 : i32
    %c0_i32_0 = arith.constant 0 : i32
    return %arg0, %c0_i32, %arg1 : i32, i32, i32
  }
}

module attributes {stable_mosaic.version = 11 : i64} {
  func.func @_s2d_conv_kernel(%arg0: i32, %arg1: i32, %arg2: memref<1x30x512xbf16, #tpu.memory_space<vmem>>, %arg3: memref<2x2x512x128xbf16, #tpu.memory_space<vmem>>, %arg4: memref<1x128xf32, #tpu.memory_space<vmem>>, %arg5: memref<1x20x128xf32, #tpu.memory_space<vmem>>) attributes {dimension_semantics = [#tpu.dimension_semantics<parallel>, #tpu.dimension_semantics<parallel>], iteration_bounds = array<i64: 2, 1>, scalar_prefetch = 0 : i64, scratch_operands = 0 : i64, tpu.core_type = #tpu.core_type<tc>, window_params = [{transform_indices = @transform_0, window_bounds = array<i64: 1, 30, 512>}, {transform_indices = @transform_1, window_bounds = array<i64: 2, 2, 512, 128>}, {transform_indices = @transform_2, window_bounds = array<i64: 1, 128>}, {transform_indices = @transform_3, window_bounds = array<i64: 1, 20, 128>}]} {
    %c0 = arith.constant 0 : index
    %c0_0 = arith.constant 0 : index
    %c0_1 = arith.constant 0 : index
    %0 = vector.load %arg2[%c0, %c0_0, %c0_1] : memref<1x30x512xbf16, #tpu.memory_space<vmem>>, vector<1x20x512xbf16>
    %1 = vector.shape_cast %0 : vector<1x20x512xbf16> to vector<20x512xbf16>
    %c0_2 = arith.constant 0 : index
    %c0_3 = arith.constant 0 : index
    %c0_4 = arith.constant 0 : index
    %c0_5 = arith.constant 0 : index
    %2 = vector.load %arg3[%c0_2, %c0_3, %c0_4, %c0_5] : memref<2x2x512x128xbf16, #tpu.memory_space<vmem>>, vector<1x1x512x128xbf16>
    %3 = vector.shape_cast %2 : vector<1x1x512x128xbf16> to vector<512x128xbf16>
    %cst = arith.constant dense<0.000000e+00> : vector<20x128xf32>
    %4 = tpu.matmul %1, %3, %cst {dimension_numbers = #tpu.dot_dimension_numbers<[1], [0], [0], [1], [0, 0, 1, 1], [], []>} : vector<20x512xbf16>, vector<512x128xbf16>, vector<20x128xf32> -> vector<20x128xf32>
    %c0_6 = arith.constant 0 : index
    %c1 = arith.constant 1 : index
    %c0_7 = arith.constant 0 : index
    %5 = vector.load %arg2[%c0_6, %c1, %c0_7] : memref<1x30x512xbf16, #tpu.memory_space<vmem>>, vector<1x20x512xbf16>
    %6 = vector.shape_cast %5 : vector<1x20x512xbf16> to vector<20x512xbf16>
    %c0_8 = arith.constant 0 : index
    %c1_9 = arith.constant 1 : index
    %c0_10 = arith.constant 0 : index
    %c0_11 = arith.constant 0 : index
    %7 = vector.load %arg3[%c0_8, %c1_9, %c0_10, %c0_11] : memref<2x2x512x128xbf16, #tpu.memory_space<vmem>>, vector<1x1x512x128xbf16>
    %8 = vector.shape_cast %7 : vector<1x1x512x128xbf16> to vector<512x128xbf16>
    %cst_12 = arith.constant dense<0.000000e+00> : vector<20x128xf32>
    %9 = tpu.matmul %6, %8, %cst_12 {dimension_numbers = #tpu.dot_dimension_numbers<[1], [0], [0], [1], [0, 0, 1, 1], [], []>} : vector<20x512xbf16>, vector<512x128xbf16>, vector<20x128xf32> -> vector<20x128xf32>
    %10 = arith.addf %4, %9 : vector<20x128xf32>
    %c0_13 = arith.constant 0 : index
    %c5 = arith.constant 5 : index
    %c0_14 = arith.constant 0 : index
    %11 = vector.load %arg2[%c0_13, %c5, %c0_14] : memref<1x30x512xbf16, #tpu.memory_space<vmem>>, vector<1x20x512xbf16>
    %12 = vector.shape_cast %11 : vector<1x20x512xbf16> to vector<20x512xbf16>
    %c1_15 = arith.constant 1 : index
    %c0_16 = arith.constant 0 : index
    %c0_17 = arith.constant 0 : index
    %c0_18 = arith.constant 0 : index
    %13 = vector.load %arg3[%c1_15, %c0_16, %c0_17, %c0_18] : memref<2x2x512x128xbf16, #tpu.memory_space<vmem>>, vector<1x1x512x128xbf16>
    %14 = vector.shape_cast %13 : vector<1x1x512x128xbf16> to vector<512x128xbf16>
    %cst_19 = arith.constant dense<0.000000e+00> : vector<20x128xf32>
    %15 = tpu.matmul %12, %14, %cst_19 {dimension_numbers = #tpu.dot_dimension_numbers<[1], [0], [0], [1], [0, 0, 1, 1], [], []>} : vector<20x512xbf16>, vector<512x128xbf16>, vector<20x128xf32> -> vector<20x128xf32>
    %16 = arith.addf %10, %15 : vector<20x128xf32>
    %c0_20 = arith.constant 0 : index
    %c6 = arith.constant 6 : index
    %c0_21 = arith.constant 0 : index
    %17 = vector.load %arg2[%c0_20, %c6, %c0_21] : memref<1x30x512xbf16, #tpu.memory_space<vmem>>, vector<1x20x512xbf16>
    %18 = vector.shape_cast %17 : vector<1x20x512xbf16> to vector<20x512xbf16>
    %c1_22 = arith.constant 1 : index
    %c1_23 = arith.constant 1 : index
    %c0_24 = arith.constant 0 : index
    %c0_25 = arith.constant 0 : index
    %19 = vector.load %arg3[%c1_22, %c1_23, %c0_24, %c0_25] : memref<2x2x512x128xbf16, #tpu.memory_space<vmem>>, vector<1x1x512x128xbf16>
    %20 = vector.shape_cast %19 : vector<1x1x512x128xbf16> to vector<512x128xbf16>
    %cst_26 = arith.constant dense<0.000000e+00> : vector<20x128xf32>
    %21 = tpu.matmul %18, %20, %cst_26 {dimension_numbers = #tpu.dot_dimension_numbers<[1], [0], [0], [1], [0, 0, 1, 1], [], []>} : vector<20x512xbf16>, vector<512x128xbf16>, vector<20x128xf32> -> vector<20x128xf32>
    %22 = arith.addf %16, %21 : vector<20x128xf32>
    %c0_27 = arith.constant 0 : index
    %c0_28 = arith.constant 0 : index
    %23 = vector.load %arg4[%c0_27, %c0_28] : memref<1x128xf32, #tpu.memory_space<vmem>>, vector<1x128xf32>
    %24 = vector.broadcast %23 : vector<1x128xf32> to vector<20x128xf32>
    %25 = arith.addf %22, %24 : vector<20x128xf32>
    %c0_29 = arith.constant 0 : index
    %c0_30 = arith.constant 0 : index
    %c0_31 = arith.constant 0 : index
    %26 = vector.load %arg5[%c0_29, %c0_30, %c0_31] : memref<1x20x128xf32, #tpu.memory_space<vmem>>, vector<1x20x128xf32>
    %27 = vector.shape_cast %26 : vector<1x20x128xf32> to vector<20x128xf32>
    %28 = vector.shape_cast %25 : vector<20x128xf32> to vector<1x20x128xf32>
    tpu.vector_store %arg5[%c0_29, %c0_30, %c0_31], %28 {strides = array<i32>} : memref<1x20x128xf32, #tpu.memory_space<vmem>>, vector<1x20x128xf32>,
    return
  }
  func.func @transform_0(%arg0: i32, %arg1: i32) -> (i32, i32, i32) {
    %c0_i32 = arith.constant 0 : i32
    %c0_i32_0 = arith.constant 0 : i32
    %c0_i32_1 = arith.constant 0 : i32
    return %arg0, %c0_i32, %c0_i32_0 : i32, i32, i32
  }
  func.func @transform_1(%arg0: i32, %arg1: i32) -> (i32, i32, i32, i32) {
    %c0_i32 = arith.constant 0 : i32
    %c0_i32_0 = arith.constant 0 : i32
    %c0_i32_1 = arith.constant 0 : i32
    %c0_i32_2 = arith.constant 0 : i32
    return %c0_i32, %c0_i32_0, %c0_i32_1, %arg1 : i32, i32, i32, i32
  }
  func.func @transform_2(%arg0: i32, %arg1: i32) -> (i32, i32) {
    %c0_i32 = arith.constant 0 : i32
    %c0_i32_0 = arith.constant 0 : i32
    return %c0_i32, %arg1 : i32, i32
  }
  func.func @transform_3(%arg0: i32, %arg1: i32) -> (i32, i32, i32) {
    %c0_i32 = arith.constant 0 : i32
    %c0_i32_0 = arith.constant 0 : i32
    return %arg0, %c0_i32, %arg1 : i32, i32, i32
  }
}

</mosaic_0001>

<bundles_post_ra>
// kernel: _lambda_.2
= control target key start
LH: loop header
LB: loop body
LE: loop exit
PB: predicated region body
PF: predicated region fallthrough
CT: control target
= control target key end

     0   :  { %s1427_s15 = smov 0   ;;  %s1429_s16 = smov 0   ;;  %s1649_s0 = inlined_call_operand.vmem [shape: bf16[2,90,32], index: 0, kind: input, shape index: {}]   ;;  %s1650_s1 = inlined_call_operand.vmem [shape: bf16[2,2,32,128], index: 1, kind: input, shape index: {}]   ;;  %s1651_s2 = inlined_call_operand.vmem [shape: f32[1,128], index: 2, kind: input, shape index: {}]   ;;  %s1652_s3 = inlined_call_operand.vmem [shape: f32[2,72,128], index: 3, kind: output, shape index: {0}]   ;;  %s1653_s4 = inlined_call_operand.vmem [shape: bf16[2,72,128], index: 4, kind: output, shape index: {1}]  }
   0x1   :  { %s1431_s17 = smov 0  }
   0x2 LB: > { %s27_s18 = sadd.s32 1, %s1394_s16  ;;  %p1103_p0 = scmp.ge.s32.totalorder %s1398_s17, 1  ;;  %s1398_s17 = sphi %s1431_s17, %s15_s17   ;;  %s1394_s16 = sphi %s1429_s16, %s1655_s16   ;;  %s1390_s15 = sphi %s1427_s15, %s1654_s15  }
   0x3   : > { %p29_p1 = scmp.ge.s32.totalorder %s27_s18, 2  ;;  %p198_p2 = scmp.lt.s32.totalorder %s1398_s17, 3 }
   0x5   : > { %s1657_s18 = smov (%p29_p1, %s27_s18), 0  ;;  %p199_p3 = pnand %p1103_p0, %p198_p2 }
   0x6   : > { %p242_p4 = scmp.lt.s32.totalorder (!%p199_p3), %s1390_s15, 1 }
   0x7   : > { %202 = sbr.rel (%p199_p3) target bundleno = 300 (0x12c), region = 32 }
   0xc   : > { %v1356_v0 = vld [vmem:[%s1650_s1 + $0x8] sm:$0xff]   ;;  %v1400_v1 = vmov 0.0   ;;  %v1357_v2 = vld [vmem:[%s1650_s1 + $0x18] sm:$0xff]   ;;  %v1358_v3 = vld [vmem:[%s1650_s1] sm:$0xff]   ;;  %vm1401_vm0 = vmmov 0   ;;  %s1659_s15 = smov (!%p242_p4, %s1390_s15), 1 }
   0xd   : > { %1255 = vmatprep.subr.bf16.mxu1 %v1400_v1  ;;  %1231 = vmatprep.subr.bf16.mxu0 %v1400_v1  ;;  %v1359_v4 = vld [vmem:[%s1650_s1 + $0x10] sm:$0xff]   ;;  %s1327_s27 = smul.u32 48, %s1659_s15  ;;  %vm367_vm1 = vcmask 261120   ;;  %v1363_v5 = vld [vmem:[%s1650_s1 + $0x38] sm:$0xff]   ;;  %vm315_vm2 = vsmask.f32 7424 }
   0xe   : > { %1256 = vmatpush3.bf16.msra.mxu1 %v1356_v0  ;;  %1259 = vmatprep.mubr.msk.bf16.mxu1 %vm1401_vm0, %v1400_v1  ;;  %v1367_v12 = vld [vmem:[%s1650_s1 + $0x30] sm:$0xff]   ;;  %v1362_v16 = vld [vmem:[%s1650_s1 + $0x28] sm:$0xff]   ;;  %v1366_v23 = vld [vmem:[%s1650_s1 + $0x20] sm:$0xff]   ;;  %vm747_vm3 = vcmask 1046528   ;;  %s1328_s13 = smul.u32 72, %s1659_s15 }
   0xf   : > { %1232 = vmatpush3.bf16.msra.mxu0 %v1357_v2  ;;  %1257 = vmatprep.subr.bf16.mxu1 %v1400_v1  ;;  %s1472_s30 = scalar_lea.vmem %s1649_s0, %s1327_s27  ;;  %s1329_s23 = smul.u32 36, %s1659_s15 }
  0x10   : > { %1233 = vmatprep.subr.bf16.mxu0 %v1400_v1  ;;  %1235 = vmatprep.mubr.msk.bf16.mxu0 %vm1401_vm0, %v1400_v1  ;;  %v1360_v6 = vld [vmem:[%s1472_s30] sm:$0xff]   ;;  %v1361_v7 = vld [vmem:[%s1472_s30 + $0x8] sm:$0xff]   ;;  %v1364_v11 = vld [vmem:[%s1472_s30 + $0x10] sm:$0xff]   ;;  %s1599_s22 = scalar_lea.vmem %s1652_s3, %s1328_s13 }
  0x11   : > { %v317_v8 = vshrl.u32 %v1360_v6, 16  ;;  %v319_v9 = vshll.u32 %v1360_v6, 16  ;;  %v324_v10 = vshll.u32 %v1361_v7, 16  ;;  %v328_v17 = vshrl.u32 %v1361_v7, 16  ;;  %v1365_v22 = vld [vmem:[%s1472_s30 + $0x18] sm:$0xff]   ;;  %v1371_v43 = vld [vmem:[%s1472_s30 + $0xc] sm:$0xff]   ;;  %s1609_s26 = scalar_lea.vmem %s1653_s4, %s1329_s23 }
  0x12   : > { %1258 = vmatpush3.bf16.msra.mxu1 %v1358_v3  ;;  %v332_v18 = vshll.u32 %v1364_v11, 16  ;;  %v336_v25 = vshrl.u32 %v1364_v11, 16  ;;  %v340_v26 = vshll.u32 %v1365_v22, 16  ;;  %v279_v27 = vld [vmem:[%s1472_s30 + $0x20] sm:$0xf]  ;;  %v344_v33 = vshrl.u32 %v1365_v22, 16 }
  0x13   : > { %1234 = vmatpush3.bf16.msra.mxu0 %v1359_v4  ;;  %1303 = vmatprep.subr.bf16.mxu1 %v1400_v1  ;;  %v321_v13 = vrot.slane %v319_v9, 1  ;;  %v326_v14 = vrot.slane %v324_v10, 1  ;;  %v284_v28 = vld [vmem:[%s1472_s30 + $0x24] sm:$0x1]  ;;  %v552_v38 = vld [vmem:[%s1472_s30 + $0x8] sm:$0xf]  ;;  %v1123_v41 = vcombine.low %v279_v27, %v279_v27 }
  0x14   : > { %1279 = vmatprep.subr.bf16.mxu0 %v1400_v1  ;;  %v334_v21 = vrot.slane %v332_v18, 1  ;;  %v342_v30 = vrot.slane %v340_v26, 1  ;;  %v1115_v31 = vcombine.low %v279_v27, %v284_v28  ;;  %v551_v37 = vld [vmem:[%s1472_s30 + $0x4] sm:$0xf]  ;;  %v749_v48 = vrot.slane %v1371_v43, 1  ;;  %v1373_v54 = vld [vmem:[%s1472_s30 + $0x14] sm:$0xff]  }
  0x15   : > { %1260 = vmatmul.mubr.msk.bf16.vlgmr.msra.gmra.mxu1 %vm367_vm1, %v1360_v6  ;;  %v322_v15 = vor.u32 %v321_v13, %v317_v8  ;;  %v330_v20 = vor.u32 %v328_v17, %v326_v14  ;;  %v738_v39 = vld [vmem:[%s1472_s30 + $0x4] sm:$0xe]  ;;  %v1135_v42 = vcombine.low %v551_v37, %v552_v38  ;;  %v599_v52 = vshll.u32 %v1371_v43, 16  ;;  %v1374_v62 = vld [vmem:[%s1472_s30 + $0x1c] sm:$0xff]  }
  0x16   : > { %1304 = vmatpush3.bf16.msra.mxu1 %v1363_v5  ;;  %1263 = vmatprep.mubr.msk.bf16.mxu1 %vm1401_vm0, %v1400_v1  ;;  %v338_v29 = vor.u32 %v336_v25, %v334_v21  ;;  %v348_v34 = vshll.u32 %v1115_v31, 16  ;;  %v346_v35 = vor.u32 %v344_v33, %v342_v30  ;;  %v1151_v44 = vcombine.low %v738_v39, %v552_v38 }
  0x17   : > { %1305 = vmatprep.subr.bf16.mxu1 %v1400_v1  ;;  %v327_v19 = vsel %vm315_vm2, %v322_v15, %v326_v14  ;;  %v335_v24 = vsel %vm315_vm2, %v330_v20, %v334_v21  ;;  %v352_v45 = vshrl.u32 %v1115_v31, 16  ;;  %v594_v46 = vshll.u32 %v1135_v42, 16 }
  0x18   : > { %1236 = vmatmul.mubr.msk.bf16.vlgmr.msra.gmra.mxu0 %vm367_vm1, %v327_v19  ;;  %v343_v32 = vsel %vm315_vm2, %v338_v29, %v342_v30  ;;  %v350_v36 = vrot.slane %v348_v34, 1  ;;  %v748_v47 = vrot.slane %v1151_v44, 1  ;;  %v592_v50 = vshrl.u32 %v1135_v42, 16 }
  0x19   : > { %1280 = vmatpush3.bf16.msra.mxu0 %v1362_v16  ;;  %1239 = vmatprep.mubr.msk.bf16.mxu0 %vm1401_vm0, %v1400_v1  ;;  %v596_v51 = vrot.slane %v594_v46, 1  ;;  %v601_v56 = vrot.slane %v599_v52, 1  ;;  %v751_v57 = vrot.slane %v1373_v54, 1  ;;  %v603_v59 = vshrl.u32 %v1371_v43, 16 }
  0x1a   : > { %1306 = vmatpush3.bf16.msra.mxu1 %v1367_v12  ;;  %1281 = vmatprep.subr.bf16.mxu0 %v1400_v1  ;;  %v351_v40 = vsel %vm315_vm2, %v346_v35, %v350_v36  ;;  %v354_v49 = vor.u32 %v352_v45, %v350_v36  ;;  %v750_v53 = vsel %vm747_vm3, %v748_v47, %v749_v48  ;;  %v607_v60 = vshll.u32 %v1373_v54, 16 }
  0x1b   : > { %v597_v55 = vor.u32 %v596_v51, %v592_v50  ;;  %v752_v61 = vsel %vm747_vm3, %v749_v48, %v751_v57  ;;  %v605_v63 = vor.u32 %v603_v59, %v601_v56  ;;  %v753_v2 = vrot.slane %v1374_v62, 1 }
  0x1c   : > { %v609_v0 = vrot.slane %v607_v60, 1  ;;  %v611_v4 = vshrl.u32 %v1373_v54, 16  ;;  %v615_v5 = vshll.u32 %v1374_v62, 16  ;;  %v619_v12 = vshrl.u32 %v1374_v62, 16 }
  0x1d   : > { %1264 = vmatmul.mubr.msk.bf16.gmra.mxu1 %vm367_vm1, %v1361_v7  ;;  %1282 = vmatpush3.bf16.msra.mxu0 %v1366_v23  ;;  %v602_v58 = vsel %vm315_vm2, %v597_v55, %v601_v56  ;;  %v754_v6 = vsel %vm747_vm3, %v751_v57, %v753_v2  ;;  %v1375_v7 = vld [vmem:[%s1472_s30 + $0x24] sm:$0x1f]  }
  0x1e   : > { %1267 = vmatprep.mubr.msk.bf16.mxu1 %vm1401_vm0, %v1400_v1  ;;  %v610_v3 = vsel %vm315_vm2, %v605_v63, %v609_v0  ;;  %v613_v8 = vor.u32 %v611_v4, %v609_v0  ;;  %v617_v9 = vrot.slane %v615_v5, 1  ;;  %v755_v10 = vrot.slane %v1375_v7, 1  ;;  %v1594_v4 = vld [vmem:[%s1651_s2] ss:$0 sm:$0xff] }
  0x1f   : > { %v623_v13 = vshll.u32 %v1375_v7, 16  ;;  %v627_v18 = vshrl.u32 %v1375_v7, 16 }
  0x20   : > { %1240 = vmatmul.mubr.msk.bf16.gmra.mxu0 %vm367_vm1, %v335_v24  ;;  %v756_v14 = vsel %vm747_vm3, %v753_v2, %v755_v10  ;;  %v621_v15 = vor.u32 %v619_v12, %v617_v9 }
  0x21   : > { %1243 = vmatprep.mubr.msk.bf16.mxu0 %vm1401_vm0, %v1400_v1  ;;  %v625_v16 = vrot.slane %v623_v13, 1 }
  0x23   : > { %v626_v17 = vsel %vm315_vm2, %v621_v15, %v625_v16  ;;  %v629_v19 = vor.u32 %v627_v18, %v625_v16 }
  0x25   : > { %1268 = vmatmul.mubr.msk.bf16.gmra.mxu1 %vm367_vm1, %v1364_v11  ;;  %v618_v11 = vsel %vm315_vm2, %v613_v8, %v617_v9 }
  0x26   : > { %1271 = vmatprep.mubr.msk.bf16.mxu1 %vm1401_vm0, %v1400_v1 }
  0x28   : > { %1244 = vmatmul.mubr.msk.bf16.gmra.mxu0 %vm367_vm1, %v343_v32 }
  0x29   : > { %1247 = vmatprep.mubr.msk.bf16.mxu0 %vm1401_vm0, %v1400_v1 }
  0x2d   : > { %1272 = vmatmul.mubr.msk.bf16.gmra.mxu1 %vm367_vm1, %v1365_v22 }
  0x2e   : > { %1275 = vmatprep.mubr.msk.bf16.mxu1 %vm1401_vm0, %v1400_v1 }
  0x30   : > { %1248 = vmatmul.mubr.msk.bf16.gmra.mxu0 %vm367_vm1, %v351_v40 }
  0x31   : > { %1251 = vmatprep.mubr.msk.bf16.mxu0 %vm1401_vm0, %v1400_v1 }
  0x35   : > { %1276 = vmatmul.mubr.msk.bf16.gmra.mxu1 %vm367_vm1, %v1123_v41 }
  0x36   : > { %1307 = vmatprep.mubr.msk.bf16.mxu1 %vm1401_vm0, %v1400_v1 }
  0x38   : > { %1252 = vmatmul.mubr.msk.bf16.gmra.mxu0 %vm367_vm1, %v354_v49 }
  0x39   : > { %1283 = vmatprep.mubr.msk.bf16.mxu0 %vm1401_vm0, %v1400_v1 }
  0x3d   : > { %1308 = vmatmul.mubr.msk.bf16.vlgmr.msra.gmra.mxu1 %vm367_vm1, %v750_v53 }
  0x3e   : > { %1311 = vmatprep.mubr.msk.bf16.mxu1 %vm1401_vm0, %v1400_v1 }
  0x40   : > { %1284 = vmatmul.mubr.msk.bf16.vlgmr.msra.gmra.mxu0 %vm367_vm1, %v602_v58 }
  0x41   : > { %1287 = vmatprep.mubr.msk.bf16.mxu0 %vm1401_vm0, %v1400_v1 }
  0x45   : > { %1312 = vmatmul.mubr.msk.bf16.gmra.mxu1 %vm367_vm1, %v752_v61 }
  0x46   : > { %1315 = vmatprep.mubr.msk.bf16.mxu1 %vm1401_vm0, %v1400_v1 }
  0x48   : > { %1288 = vmatmul.mubr.msk.bf16.gmra.mxu0 %vm367_vm1, %v610_v3 }
  0x49   : > { %1291 = vmatprep.mubr.msk.bf16.mxu0 %vm1401_vm0, %v1400_v1 }
  0x4d   : > { %1316 = vmatmul.mubr.msk.bf16.gmra.mxu1 %vm367_vm1, %v754_v6 }
  0x4e   : > { %1319 = vmatprep.mubr.msk.bf16.mxu1 %vm1401_vm0, %v1400_v1 }
  0x50   : > { %1292 = vmatmul.mubr.msk.bf16.gmra.mxu0 %vm367_vm1, %v618_v11 }
  0x51   : > { %1295 = vmatprep.mubr.msk.bf16.mxu0 %vm1401_vm0, %v1400_v1 }
  0x55   : > { %1320 = vmatmul.mubr.msk.bf16.gmra.mxu1 %vm367_vm1, %v756_v14 }
  0x56   : > { %1323 = vmatprep.mubr.msk.bf16.mxu1 %vm1401_vm0, %v1400_v1 }
  0x58   : > { %1296 = vmatmul.mubr.msk.bf16.gmra.mxu0 %vm367_vm1, %v626_v17 }
  0x59   : > { %1299 = vmatprep.mubr.msk.bf16.mxu0 %vm1401_vm0, %v1400_v1 }
  0x5d   : > { %1324 = vmatmul.mubr.msk.bf16.gmra.mxu1 %vm367_vm1, %v755_v10 }
  0x60   : > { %1300 = vmatmul.mubr.msk.bf16.gmra.mxu0 %vm367_vm1, %v629_v19 }
  0xd5   : > { %v513_v20 = vpop.f32.mrf.mxu1 }
  0xd7   : > { %v1261_v21 = vpop.f32.mrf.mxu1 }
  0xd8   : > { %v417_v24 = vpop.f32.mrf.mxu0 }
  0xd9   : > { %v516_v22 = vpop.f32.mrf.mxu1  ;;  %v514_v62 = vadd.f32 %v513_v20, %v417_v24 }
  0xda   : > { %v1237_v26 = vpop.f32.mrf.mxu0 }
  0xdb   : > { %v1262_v23 = vpop.f32.mrf.mxu1 }
  0xdc   : > { %v420_v28 = vpop.f32.mrf.mxu0 }
  0xdd   : > { %v521_v25 = vpop.f32.mrf.mxu1  ;;  %v517_v6 = vadd.f32 %v516_v22, %v420_v28 }
  0xde   : > { %v1238_v30 = vpop.f32.mrf.mxu0 }
  0xdf   : > { %v1265_v27 = vpop.f32.mrf.mxu1 }
  0xe0   : > { %v425_v32 = vpop.f32.mrf.mxu0 }
  0xe1   : > { %v524_v29 = vpop.f32.mrf.mxu1  ;;  %v522_v14 = vadd.f32 %v521_v25, %v425_v32 }
  0xe2   : > { %v1241_v34 = vpop.f32.mrf.mxu0 }
  0xe3   : > { %v1266_v31 = vpop.f32.mrf.mxu1 }
  0xe4   : > { %v428_v35 = vpop.f32.mrf.mxu0 }
  0xe5   : > { %v1570_v33 = vpop.f32.mrf.mxu1  ;;  %v525_v22 = vadd.f32 %v524_v29, %v428_v35 }
  0xe6   : > { %v1242_v37 = vpop.f32.mrf.mxu0 }
  0xe7   : > { %v1269_v1 = vpop.f32.mrf.mxu1 }
  0xe8   : > { %v1574_v39 = vpop.f32.mrf.mxu0 }
  0xe9   : > { %v1572_v36 = vpop.f32.mrf.mxu1  ;;  %v530_v29 = vadd.f32 %v1570_v33, %v1574_v39 }
  0xea   : > { %v1245_v41 = vpop.f32.mrf.mxu0 }
  0xeb   : > { %v1270_v38 = vpop.f32.mrf.mxu1 }
  0xec   : > { %v1578_v43 = vpop.f32.mrf.mxu0 }
  0xed   : > { %v1576_v40 = vpop.f32.mrf.mxu1 }
  0xee   : > { %v1246_v45 = vpop.f32.mrf.mxu0 }
  0xef   : > { %v1273_v42 = vpop.f32.mrf.mxu1 }
  0xf0   : > { %v1582_v47 = vpop.f32.mrf.mxu0 }
  0xf1   : > { %v1580_v44 = vpop.f32.mrf.mxu1 }
  0xf2   : > { %v1249_v49 = vpop.f32.mrf.mxu0 }
  0xf3   : > { %v1274_v46 = vpop.f32.mrf.mxu1 }
  0xf4   : > { %v1586_v51 = vpop.f32.mrf.mxu0  ;;  %v533_v46 = vadd.f32 %v1572_v36, %v1578_v43 }
  0xf5   : > { %v1584_v48 = vpop.f32.mrf.mxu1 }
  0xf6   : > { %v1250_v53 = vpop.f32.mrf.mxu0 }
  0xf7   : > { %v1277_v50 = vpop.f32.mrf.mxu1 }
  0xf8   : > { %v1588_v55 = vpop.f32.mrf.mxu0 }
  0xf9   : > { %v548_v52 = vpop.f32.mrf.mxu1 }
  0xfa   : > { %v1253_v57 = vpop.f32.mrf.mxu0 }
  0xfb   : > { %v1278_v54 = vpop.f32.mrf.mxu1 }
  0xfc   : > { %v452_v59 = vpop.f32.mrf.mxu0 }
  0xfd   : > { %v818_v56 = vpop.f32.mrf.mxu1  ;;  %v538_v59 = vadd.f32 %v1576_v40, %v1582_v47 }
  0xfe   : > { %v1254_v61 = vpop.f32.mrf.mxu0 }
  0xff   : > { %v1309_v58 = vpop.f32.mrf.mxu1 }
 0x100   : > { %v691_v0 = vpop.f32.mrf.mxu0 }
 0x101   : > { %v821_v60 = vpop.f32.mrf.mxu1  ;;  %v729_v2 = vadd.f32 %v691_v0, %v514_v62 }
 0x102   : > { %v1285_v5 = vpop.f32.mrf.mxu0 }
 0x103   : > { %v1310_v63 = vpop.f32.mrf.mxu1  ;;  %v856_v7 = vadd.f32 %v818_v56, %v729_v2  ;;  %v541_v2 = vadd.f32 %v1580_v44, %v1586_v51 }
 0x104   : > { %v694_v9 = vpop.f32.mrf.mxu0 }
 0x105   : > { %v826_v3 = vpop.f32.mrf.mxu1  ;;  %v872_v10 = vadd.f32 %v1594_v4, %v856_v7  ;;  %v730_v11 = vadd.f32 %v694_v9, %v517_v6 }
 0x106   : > { %v1286_v13 = vpop.f32.mrf.mxu0 }
 0x107   : > { %v1313_v8 = vpop.f32.mrf.mxu1  ;;  %881 = vst [vmem:[%s1599_s22] sm:$0xff] %v872_v10  ;;  %v857_v15 = vadd.f32 %v821_v60, %v730_v11  ;;  %v890_v23 = vmax.f32 %v872_v10, 0.0 }
 0x108   : > { %v699_v17 = vpop.f32.mrf.mxu0 }
 0x109   : > { %v829_v12 = vpop.f32.mrf.mxu1  ;;  %v873_v18 = vadd.f32 %v1594_v4, %v857_v15  ;;  %v731_v19 = vadd.f32 %v699_v17, %v522_v14 }
 0x10a   : > { %v1289_v21 = vpop.f32.mrf.mxu0 }
 0x10b   : > { %v1314_v16 = vpop.f32.mrf.mxu1  ;;  %882 = vst [vmem:[%s1599_s22 + $0x8] sm:$0xff] %v873_v18  ;;  %v891_v24 = vmax.f32 %v873_v18, 0.0  ;;  %v858_v26 = vadd.f32 %v826_v3, %v731_v19 }
 0x10c   : > { %v702_v25 = vpop.f32.mrf.mxu0 }
 0x10d   : > { %v834_v20 = vpop.f32.mrf.mxu1  ;;  %v1183_v28 = vpack.c.bf16 %v891_v24, %v890_v23  ;;  %v874_v30 = vadd.f32 %v1594_v4, %v858_v26  ;;  %v732_v31 = vadd.f32 %v702_v25, %v525_v22 }
 0x10e   : > { %v1290_v34 = vpop.f32.mrf.mxu0 }
 0x10f   : > { %v1317_v27 = vpop.f32.mrf.mxu1  ;;  %1184 = vst [vmem:[%s1609_s26] sm:$0xff] %v1183_v28   ;;  %883 = vst [vmem:[%s1599_s22 + $0x10] sm:$0xff] %v874_v30  ;;  %v859_v1 = vadd.f32 %v829_v12, %v732_v31  ;;  %v892_v49 = vmax.f32 %v874_v30, 0.0  ;;  %v546_v12 = vadd.f32 %v1584_v48, %v1588_v55 }
 0x110   : > { %v707_v37 = vpop.f32.mrf.mxu0 }
 0x111   : > { %v837_v32 = vpop.f32.mrf.mxu1  ;;  %v875_v38 = vadd.f32 %v1594_v4, %v859_v1  ;;  %v733_v41 = vadd.f32 %v707_v37, %v530_v29 }
 0x112   : > { %v1293_v45 = vpop.f32.mrf.mxu0 }
 0x113   : > { %v1318_v35 = vpop.f32.mrf.mxu1  ;;  %884 = vst [vmem:[%s1599_s22 + $0x18] sm:$0xff] %v875_v38  ;;  %v893_v50 = vmax.f32 %v875_v38, 0.0  ;;  %v860_v52 = vadd.f32 %v834_v20, %v733_v41 }
 0x114   : > { %v710_v39 = vpop.f32.mrf.mxu0 }
 0x115   : > { %v842_v42 = vpop.f32.mrf.mxu1  ;;  %v1188_v53 = vpack.c.bf16 %v893_v50, %v892_v49  ;;  %v876_v54 = vadd.f32 %v1594_v4, %v860_v52  ;;  %v734_v56 = vadd.f32 %v710_v39, %v533_v46 }
 0x116   : > { %v1294_v58 = vpop.f32.mrf.mxu0 }
 0x117   : > { %v1321_v33 = vpop.f32.mrf.mxu1  ;;  %1200 = vst [vmem:[%s1609_s26 + $0x8] sm:$0xff] %v1188_v53   ;;  %885 = vst [vmem:[%s1599_s22 + $0x20] sm:$0xff] %v876_v54  ;;  %v861_v60 = vadd.f32 %v837_v32, %v734_v56  ;;  %v894_v3 = vmax.f32 %v876_v54, 0.0 }
 0x118   : > { %v715_v43 = vpop.f32.mrf.mxu0 }
 0x119   : > { %v845_v57 = vpop.f32.mrf.mxu1  ;;  %v877_v61 = vadd.f32 %v1594_v4, %v861_v60  ;;  %v735_v62 = vadd.f32 %v715_v43, %v538_v59 }
 0x11a   : > { %v1297_v0 = vpop.f32.mrf.mxu0 }
 0x11b   : > { %v1322_v36 = vpop.f32.mrf.mxu1  ;;  %886 = vst [vmem:[%s1599_s22 + $0x28] sm:$0xff] %v877_v61  ;;  %v895_v5 = vmax.f32 %v877_v61, 0.0  ;;  %v862_v6 = vadd.f32 %v842_v42, %v735_v62 }
 0x11c   : > { %v718_v47 = vpop.f32.mrf.mxu0 }
 0x11d   : > { %v850_v63 = vpop.f32.mrf.mxu1  ;;  %v1193_v7 = vpack.c.bf16 %v895_v5, %v894_v3  ;;  %v878_v8 = vadd.f32 %v1594_v4, %v862_v6  ;;  %v736_v9 = vadd.f32 %v718_v47, %v541_v2 }
 0x11e   : > { %v1298_v11 = vpop.f32.mrf.mxu0 }
 0x11f   : > { %v1325_v40 = vpop.f32.mrf.mxu1  ;;  %1201 = vst [vmem:[%s1609_s26 + $0x10] sm:$0xff] %v1193_v7   ;;  %887 = vst [vmem:[%s1599_s22 + $0x30] sm:$0xff] %v878_v8  ;;  %v863_v44 = vadd.f32 %v845_v57, %v736_v9  ;;  %v896_v17 = vmax.f32 %v878_v8, 0.0 }
 0x120   : > { %v723_v13 = vpop.f32.mrf.mxu0 }
 0x121   : > { %v853_v10 = vpop.f32.mrf.mxu1  ;;  %v879_v14 = vadd.f32 %v1594_v4, %v863_v44  ;;  %v737_v15 = vadd.f32 %v723_v13, %v546_v12 }
 0x122   : > { %v1301_v16 = vpop.f32.mrf.mxu0 }
 0x123   : > { %v1326_v51 = vpop.f32.mrf.mxu1  ;;  %888 = vst [vmem:[%s1599_s22 + $0x38] sm:$0xff] %v879_v14  ;;  %v897_v18 = vmax.f32 %v879_v14, 0.0  ;;  %v864_v19 = vadd.f32 %v850_v63, %v737_v15 }
 0x124   : > { %v726_v20 = vpop.f32.mrf.mxu0 }
 0x125   : > { %v1198_v21 = vpack.c.bf16 %v897_v18, %v896_v17  ;;  %v880_v48 = vadd.f32 %v1594_v4, %v864_v19 }
 0x126   : > { %v1302_v55 = vpop.f32.mrf.mxu0 }
 0x127   : > { %1202 = vst [vmem:[%s1609_s26 + $0x18] sm:$0xff] %v1198_v21   ;;  %889 = vst [vmem:[%s1599_s22 + $0x40] sm:$0xff] %v880_v48  ;;  %v898_v22 = vmax.f32 %v880_v48, 0.0 }
 0x129   : > { %v1179_v23 = vpack.c.bf16 %v898_v22, %v898_v22 }
 0x12b   : > { %944 = vst [vmem:[%s1609_s26 + $0x20] sm:$0xf] %v1179_v23 }
 0x12c PF: > { %s15_s17 = sadd.s32 1, %s1398_s17   ;;  %s1654_s15 = smov %s1394_s16 }
 0x12d   : > { %p12_p5 = scmp.ge.s32.totalorder %s15_s17, 4   ;;  %s1655_s16 = smov %s1657_s18 }
 0x12f   :  { %14 = sbr.rel (!%p12_p5) target bundleno = 2 (0x2), region = 83 }

// kernel: _lambda_.3
= control target key start
LH: loop header
LB: loop body
LE: loop exit
PB: predicated region body
PF: predicated region fallthrough
CT: control target
= control target key end

     0   :  { %s2836_s12 = smov 0   ;;  %s2838_s13 = smov 0   ;;  %s3356_s0 = inlined_call_operand.vmem [shape: bf16[2,30,512], index: 0, kind: input, shape index: {}]   ;;  %s3357_s1 = inlined_call_operand.vmem [shape: bf16[2,2,512,128], index: 1, kind: input, shape index: {}]   ;;  %s3358_s2 = inlined_call_operand.vmem [shape: f32[1,128], index: 2, kind: input, shape index: {}]   ;;  %s3359_s3 = inlined_call_operand.vmem [shape: f32[2,20,128], index: 3, kind: output, shape index: {}]  }
   0x1   :  { %s2840_s14 = smov 0  }
   0x2 LB: > { %s25_s15 = sadd.s32 1, %s2810_s13  ;;  %p2035_p0 = scmp.ge.s32.totalorder %s2814_s14, 1  ;;  %s2814_s14 = sphi %s2840_s14, %s13_s14   ;;  %s2810_s13 = sphi %s2838_s13, %s3361_s13   ;;  %s2806_s12 = sphi %s2836_s12, %s3360_s12  }
   0x3   : > { %p27_p1 = scmp.ge.s32.totalorder %s25_s15, 2  ;;  %p168_p2 = scmp.lt.s32.totalorder %s2814_s14, 3 }
   0x5   : > { %s3363_s15 = smov (%p27_p1, %s25_s15), 0  ;;  %p169_p3 = pnand %p2035_p0, %p168_p2 }
   0x6   : > { %p202_p4 = scmp.lt.s32.totalorder (!%p169_p3), %s2806_s12, 1 }
   0x7   : > { %172 = sbr.rel (%p169_p3) target bundleno = 356 (0x164), region = 32 }
   0xc   : > { %v2636_v0 = vld [vmem:[%s3357_s1 + $0x178] sm:$0xff]   ;;  %v2640_v4 = vld [vmem:[%s3357_s1 + $0x170] sm:$0xff]   ;;  %v2644_v8 = vld [vmem:[%s3357_s1 + $0x168] sm:$0xff]   ;;  %s3365_s12 = smov (!%p202_p4, %s2806_s12), 1  ;;  %vm386_vm0 = vsmask.f32 7424 }
   0xd   : > { %v2637_v1 = vld [vmem:[%s3357_s1 + $0x1f8] sm:$0xff]   ;;  %2387 = vmatprep.subr.bf16.mxu0 %v2636_v0  ;;  %v2641_v5 = vld [vmem:[%s3357_s1 + $0x1f0] sm:$0xff]   ;;  %v2645_v9 = vld [vmem:[%s3357_s1 + $0x1e8] sm:$0xff]   ;;  %s2386_s24 = sshll.u32 %s3365_s12, 6  ;;  %vm1154_vm1 = vsmask.f32 5376 }
   0xe   : > { %v2638_v2 = vld [vmem:[%s3357_s1 + $0x138] sm:$0xff]   ;;  %2415 = vmatprep.subr.bf16.mxu1 %v2637_v1  ;;  %v2642_v6 = vld [vmem:[%s3357_s1 + $0x130] sm:$0xff]   ;;  %v2646_v10 = vld [vmem:[%s3357_s1 + $0x128] sm:$0xff]   ;;  %s2954_s6 = scalar_lea.vmem %s3356_s0, %s2386_s24  ;;  %vm1599_vm2 = vcmask 1044480  }
   0xf   : > { %v2639_v3 = vld [vmem:[%s3357_s1 + $0x1b8] sm:$0xff]   ;;  %2388 = vmatpush3.bf16.msra.mxu0 %v2638_v2  ;;  %v2643_v7 = vld [vmem:[%s3357_s1 + $0x1b0] sm:$0xff]   ;;  %v2647_v11 = vld [vmem:[%s3357_s1 + $0x1a8] sm:$0xff]  }
  0x10   : > { %2416 = vmatpush3.bf16.msra.mxu1 %v2639_v3  ;;  %2389 = vmatprep.subr.bf16.mxu0 %v2640_v4  ;;  %v2648_v12 = vld [vmem:[%s3357_s1 + $0x160] sm:$0xff]   ;;  %v2652_v16 = vld [vmem:[%s3357_s1 + $0x158] sm:$0xff]   ;;  %v2656_v20 = vld [vmem:[%s3357_s1 + $0x150] sm:$0xff]  }
  0x11   : > { %2417 = vmatprep.subr.bf16.mxu1 %v2641_v5  ;;  %v2649_v13 = vld [vmem:[%s3357_s1 + $0x1e0] sm:$0xff]   ;;  %v2653_v17 = vld [vmem:[%s3357_s1 + $0x1d8] sm:$0xff]   ;;  %v2657_v21 = vld [vmem:[%s3357_s1 + $0x1d0] sm:$0xff]  }
  0x12   : > { %v2650_v14 = vld [vmem:[%s3357_s1 + $0x120] sm:$0xff]   ;;  %v2654_v18 = vld [vmem:[%s3357_s1 + $0x118] sm:$0xff]   ;;  %v2658_v22 = vld [vmem:[%s3357_s1 + $0x110] sm:$0xff]  }
  0x13   : > { %2390 = vmatpush3.bf16.msra.mxu0 %v2642_v6  ;;  %v2651_v15 = vld [vmem:[%s3357_s1 + $0x1a0] sm:$0xff]   ;;  %v2655_v19 = vld [vmem:[%s3357_s1 + $0x198] sm:$0xff]   ;;  %v2659_v23 = vld [vmem:[%s3357_s1 + $0x190] sm:$0xff]  }
  0x14   : > { %2418 = vmatpush3.bf16.msra.mxu1 %v2643_v7  ;;  %2391 = vmatprep.subr.bf16.mxu0 %v2644_v8  ;;  %v2660_v24 = vld [vmem:[%s3357_s1 + $0x148] sm:$0xff]   ;;  %v2664_v28 = vld [vmem:[%s3357_s1 + $0x140] sm:$0xff]   ;;  %v2964_v33 = vld [vmem:[%s2954_s6 + $0x10] sm:$0xff] }
  0x15   : > { %2419 = vmatprep.subr.bf16.mxu1 %v2645_v9  ;;  %v2661_v25 = vld [vmem:[%s3357_s1 + $0x1c8] sm:$0xff]   ;;  %v2665_v29 = vld [vmem:[%s3357_s1 + $0x1c0] sm:$0xff]   ;;  %v2972_v38 = vld [vmem:[%s2954_s6 + $0x18] sm:$0xff] }
  0x16   : > { %v2662_v26 = vld [vmem:[%s3357_s1 + $0x108] sm:$0xff]   ;;  %v2666_v30 = vld [vmem:[%s3357_s1 + $0x100] sm:$0xff]   ;;  %v2676_v46 = vld [vmem:[%s3357_s1 + $0x78] sm:$0xff]  }
  0x17   : > { %2392 = vmatpush3.bf16.msra.mxu0 %v2646_v10  ;;  %v2663_v27 = vld [vmem:[%s3357_s1 + $0x188] sm:$0xff]   ;;  %v2667_v31 = vld [vmem:[%s3357_s1 + $0x180] sm:$0xff]   ;;  %v2677_v59 = vld [vmem:[%s3357_s1 + $0xf8] sm:$0xff]  }
  0x18   : > { %2420 = vmatpush3.bf16.msra.mxu1 %v2647_v11  ;;  %2393 = vmatprep.subr.bf16.mxu0 %v2648_v12  ;;  %v223_v32 = vld [vmem:[%s2954_s6] sm:$0xff]  ;;  %v224_v37 = vld [vmem:[%s2954_s6 + $0x8] sm:$0xff]  ;;  %v2678_v0 = vld [vmem:[%s3357_s1 + $0x38] sm:$0xff]  }
  0x19   : > { %2421 = vmatprep.subr.bf16.mxu1 %v2649_v13  ;;  %v293_v34 = vld [vmem:[%s2954_s6 + $0x20] sm:$0x77]  ;;  %v2968_v35 = vcombine.high %v223_v32, %v2964_v33  ;;  %v294_v39 = vld [vmem:[%s2954_s6 + $0x28] sm:$0x77]  ;;  %v2976_v40 = vcombine.low %v223_v32, %v2964_v33  ;;  %v2981_v42 = vcombine.high %v224_v37, %v2972_v38  ;;  %v2984_v44 = vcombine.low %v224_v37, %v2972_v38  ;;  %v2679_v7 = vld [vmem:[%s3357_s1 + $0xb8] sm:$0xff]  }
  0x1a   : > { %v2108_v36 = vcombine.high %v293_v34, %v293_v34  ;;  %v2978_v41 = vcombine.low %v293_v34, %v293_v34  ;;  %v2110_v43 = vcombine.high %v294_v39, %v294_v39  ;;  %v2986_v45 = vcombine.low %v294_v39, %v294_v39  ;;  %v2680_v10 = vld [vmem:[%s3357_s1 + $0x70] sm:$0xff]   ;;  %v2690_v32 = vld [vmem:[%s3357_s1 + $0x20] sm:$0xff]   ;;  %v2693_v37 = vld [vmem:[%s3357_s1 + $0xd8] sm:$0xff]  }
  0x1b   : > { %2394 = vmatpush3.bf16.msra.mxu0 %v2650_v14  ;;  %v400_v47 = vshrl.u32 %v2968_v35, 16  ;;  %v402_v48 = vshll.u32 %v2968_v35, 16  ;;  %v388_v50 = vshrl.u32 %v2976_v40, 16  ;;  %v424_v51 = vshrl.u32 %v2981_v42, 16  ;;  %v2681_v14 = vld [vmem:[%s3357_s1 + $0xf0] sm:$0xff]   ;;  %v2691_v34 = vld [vmem:[%s3357_s1 + $0xa0] sm:$0xff]  }
  0x1c   : > { %2422 = vmatpush3.bf16.msra.mxu1 %v2651_v15  ;;  %2395 = vmatprep.subr.bf16.mxu0 %v2652_v16  ;;  %v407_v49 = vshll.u32 %v2108_v36, 16  ;;  %v426_v52 = vshll.u32 %v2981_v42, 16  ;;  %v431_v53 = vshll.u32 %v2110_v43, 16  ;;  %v390_v54 = vshll.u32 %v2976_v40, 16  ;;  %v2682_v16 = vld [vmem:[%s3357_s1 + $0x30] sm:$0xff]   ;;  %v2694_v39 = vld [vmem:[%s3357_s1 + $0x18] sm:$0xff]  }
  0x1d   : > { %2423 = vmatprep.subr.bf16.mxu1 %v2653_v17  ;;  %v404_v55 = vrot.slane %v402_v48, 1  ;;  %v395_v57 = vshll.u32 %v2978_v41, 16  ;;  %v412_v58 = vshrl.u32 %v2984_v44, 16  ;;  %v414_v63 = vshll.u32 %v2984_v44, 16  ;;  %v2702_v48 = vld [vmem:[%s3357_s1 + $0x8] sm:$0xff]  }
  0x1e   : > { %v409_v56 = vrot.slane %v407_v49, 1  ;;  %v428_v60 = vrot.slane %v426_v52, 1  ;;  %v433_v61 = vrot.slane %v431_v53, 1  ;;  %v392_v62 = vrot.slane %v390_v54, 1  ;;  %v2703_v49 = vld [vmem:[%s3357_s1 + $0x88] sm:$0xff]   ;;  %v2706_v52 = vld [vmem:[%s3357_s1] sm:$0xff]  }
  0x1f   : > { %2396 = vmatpush3.bf16.msra.mxu0 %v2654_v18  ;;  %v405_v1 = vor.u32 %v404_v55, %v400_v47  ;;  %v397_v2 = vrot.slane %v395_v57, 1  ;;  %v419_v3 = vshll.u32 %v2986_v45, 16  ;;  %v416_v6 = vrot.slane %v414_v63, 1  ;;  %v2701_v47 = vld [vmem:[%s3357_s1 + $0xc8] sm:$0xff]   ;;  %v2707_v53 = vld [vmem:[%s3357_s1 + $0x80] sm:$0xff]   ;;  %v2708_v54 = vld [vmem:[%s3357_s1 + $0x278] sm:$0xff]  }
  0x20   : > { %2424 = vmatpush3.bf16.msra.mxu1 %v2655_v19  ;;  %2397 = vmatprep.subr.bf16.mxu0 %v2656_v20  ;;  %v429_v4 = vor.u32 %v428_v60, %v424_v51  ;;  %v393_v5 = vor.u32 %v392_v62, %v388_v50  ;;  %v438_v15 = vshrl.u32 %v2108_v36, 16  ;;  %v444_v17 = vshrl.u32 %v2110_v43, 16  ;;  %v2683_v19 = vld [vmem:[%s3357_s1 + $0xb0] sm:$0xff]   ;;  %v2692_v36 = vld [vmem:[%s3357_s1 + $0x58] sm:$0xff]   ;;  %v2704_v50 = vld [vmem:[%s3357_s1 + $0x40] sm:$0xff]  }
  0x21   : > { %2425 = vmatprep.subr.bf16.mxu1 %v2657_v21  ;;  %v410_v8 = vsel %vm386_vm0, %v405_v1, %v409_v56  ;;  %v421_v9 = vrot.slane %v419_v3, 1  ;;  %v417_v13 = vor.u32 %v416_v6, %v412_v58  ;;  %v435_v21 = vshrl.u32 %v2978_v41, 16  ;;  %v2696_v41 = vld [vmem:[%s3357_s1 + $0x50] sm:$0xff]   ;;  %v2705_v51 = vld [vmem:[%s3357_s1 + $0xc0] sm:$0xff]   ;;  %v2709_v55 = vld [vmem:[%s3357_s1 + $0x2f8] sm:$0xff]  }
  0x22   : > { %679 = vmatprep.mubr.bf16.mxu0 %v410_v8  ;;  %v434_v11 = vsel %vm386_vm0, %v429_v4, %v433_v61  ;;  %v398_v12 = vsel %vm386_vm0, %v393_v5, %v397_v2  ;;  %v440_v20 = vor.u32 %v438_v15, %v409_v56  ;;  %v2698_v43 = vld [vmem:[%s3357_s1 + $0x10] sm:$0xff]   ;;  %v2710_v56 = vld [vmem:[%s3357_s1 + $0x238] sm:$0xff]   ;;  %v227_v62 = vld [vmem:[%s2954_s6 + $0x20] sm:$0x33] }
  0x23   : > { %2398 = vmatpush3.bf16.msra.mxu0 %v2658_v22  ;;  %727 = vmatprep.mubr.bf16.mxu1 %v434_v11  ;;  %v422_v18 = vsel %vm386_vm0, %v417_v13, %v421_v9  ;;  %v2684_v22 = vld [vmem:[%s3357_s1 + $0x68] sm:$0xff]   ;;  %v2711_v57 = vld [vmem:[%s3357_s1 + $0x2b8] sm:$0xff]   ;;  %v2712_v58 = vld [vmem:[%s3357_s1 + $0x270] sm:$0xff]   ;;  %v2144_v63 = vcombine.high %v227_v62, %v227_v62  ;;  %v2143_v1 = vcombine.low %v227_v62, %v227_v62 }
  0x24   : > { %2426 = vmatpush3.bf16.msra.mxu1 %v2659_v23  ;;  %2399 = vmatprep.subr.bf16.mxu0 %v2660_v24  ;;  %v446_v23 = vor.u32 %v444_v17, %v433_v61  ;;  %v441_v24 = vshrl.u32 %v2986_v45, 16  ;;  %v2699_v45 = vld [vmem:[%s3357_s1 + $0x90] sm:$0xff]   ;;  %v2722_v4 = vld [vmem:[%s3357_s1 + $0x2a8] sm:$0xff]   ;;  %v2724_v6 = vld [vmem:[%s3357_s1 + $0x260] sm:$0xff]  }
  0x25   : > { %2427 = vmatprep.subr.bf16.mxu1 %v2661_v25  ;;  %v2685_v25 = vld [vmem:[%s3357_s1 + $0xe8] sm:$0xff]   ;;  %v2714_v60 = vld [vmem:[%s3357_s1 + $0x230] sm:$0xff]   ;;  %v2726_v8 = vld [vmem:[%s3357_s1 + $0x220] sm:$0xff]  }
  0x26   : > { %v2715_v61 = vld [vmem:[%s3357_s1 + $0x2b0] sm:$0xff]   ;;  %v2729_v11 = vld [vmem:[%s3357_s1 + $0x2d8] sm:$0xff]  }
  0x27   : > { %2400 = vmatpush3.bf16.msra.mxu0 %v2662_v26  ;;  %v2686_v26 = vld [vmem:[%s3357_s1 + $0x28] sm:$0xff]   ;;  %v2731_v13 = vld [vmem:[%s3357_s1 + $0x298] sm:$0xff]   ;;  %v2733_v15 = vld [vmem:[%s3357_s1 + $0x2d0] sm:$0xff]  }
  0x28   : > { %2428 = vmatpush3.bf16.msra.mxu1 %v2663_v27  ;;  %2401 = vmatprep.subr.bf16.mxu0 %v2664_v28  ;;  %v437_v27 = vor.u32 %v435_v21, %v397_v2  ;;  %v2687_v28 = vld [vmem:[%s3357_s1 + $0xa8] sm:$0xff]   ;;  %v2735_v17 = vld [vmem:[%s3357_s1 + $0x290] sm:$0xff]  }
  0x29   : > { %2429 = vmatprep.subr.bf16.mxu1 %v2665_v29  ;;  %v2688_v29 = vld [vmem:[%s3357_s1 + $0x60] sm:$0xff]   ;;  %v228_v2 = vld [vmem:[%s2954_s6 + $0x28] sm:$0x33] }
  0x2a   : > { %v2146_v3 = vcombine.high %v228_v2, %v228_v2  ;;  %v2145_v5 = vcombine.low %v228_v2, %v228_v2  ;;  %v2739_v21 = vld [vmem:[%s3357_s1 + $0x288] sm:$0xff]  }
  0x2b   : > { %2402 = vmatpush3.bf16.msra.mxu0 %v2666_v30  ;;  %v443_v30 = vor.u32 %v441_v24, %v421_v9  ;;  %v2727_v9 = vld [vmem:[%s3357_s1 + $0x2a0] sm:$0xff]  }
  0x2c   : > { %2430 = vmatpush3.bf16.msra.mxu1 %v2667_v31  ;;  %2443 = vmatprep.subr.bf16.mxu0 %v2676_v46  ;;  %v2689_v31 = vld [vmem:[%s3357_s1 + $0xe0] sm:$0xff]   ;;  %v2700_v46 = vld [vmem:[%s3357_s1 + $0x48] sm:$0xff]  }
  0x2d   : > { %2471 = vmatprep.subr.bf16.mxu1 %v2677_v59  ;;  %v2713_v59 = vld [vmem:[%s3357_s1 + $0x2f0] sm:$0xff]   ;;  %v2742_v24 = vld [vmem:[%s3357_s1 + $0x200] sm:$0xff]  }
  0x2e   : > { %680 = vmatmul.mubr.bf16.vlgmr.msra.gmra.mxu0 %v398_v12  ;;  %v2730_v12 = vld [vmem:[%s3357_s1 + $0x218] sm:$0xff]  }
  0x2f   : > { %2444 = vmatpush3.bf16.msra.mxu0 %v2678_v0  ;;  %728 = vmatmul.mubr.bf16.vlgmr.msra.gmra.mxu1 %v422_v18  ;;  %v2718_v0 = vld [vmem:[%s3357_s1 + $0x268] sm:$0xff]  }
  0x30   : > { %2445 = vmatprep.subr.bf16.mxu0 %v2680_v10  ;;  %2472 = vmatpush3.bf16.msra.mxu1 %v2679_v7  ;;  %v2725_v7 = vld [vmem:[%s3357_s1 + $0x2e0] sm:$0xff]   ;;  %v2728_v10 = vld [vmem:[%s3357_s1 + $0x258] sm:$0xff]   ;;  %v2736_v18 = vld [vmem:[%s3357_s1 + $0x248] sm:$0xff]  }
  0x31   : > { %687 = vmatprep.mubr.bf16.mxu0 %v440_v20  ;;  %2473 = vmatprep.subr.bf16.mxu1 %v2681_v14  ;;  %v2732_v14 = vld [vmem:[%s3357_s1 + $0x250] sm:$0xff]   ;;  %v2738_v20 = vld [vmem:[%s3357_s1 + $0x208] sm:$0xff]  }
  0x32   : > { %735 = vmatprep.mubr.bf16.mxu1 %v446_v23  ;;  %v2741_v23 = vld [vmem:[%s3357_s1 + $0x2c0] sm:$0xff]  }
  0x33   : > { %2446 = vmatpush3.bf16.msra.mxu0 %v2682_v16  ;;  %v2734_v16 = vld [vmem:[%s3357_s1 + $0x210] sm:$0xff]  }
  0x34   : > { %2447 = vmatprep.subr.bf16.mxu0 %v2684_v22  ;;  %2474 = vmatpush3.bf16.msra.mxu1 %v2683_v19  ;;  %v2737_v19 = vld [vmem:[%s3357_s1 + $0x2c8] sm:$0xff]   ;;  %v2740_v22 = vld [vmem:[%s3357_s1 + $0x240] sm:$0xff]  }
  0x35   : > { %2475 = vmatprep.subr.bf16.mxu1 %v2685_v25  ;;  %v1049_v25 = vld [vmem:[%s2954_s6] sm:$0xcc] }
  0x36   : > { %688 = vmatmul.mubr.bf16.gmra.mxu0 %v437_v27  ;;  %v2243_v27 = vcombine.low %v1049_v25, %v2964_v33 }
  0x37   : > { %2448 = vmatpush3.bf16.msra.mxu0 %v2686_v26  ;;  %985 = vmatprep.mubr.bf16.mxu0 %v2968_v35  ;;  %v2695_v35 = vld [vmem:[%s3357_s1 + $0x98] sm:$0xff]   ;;  %v2743_v26 = vld [vmem:[%s3357_s1 + $0x280] sm:$0xff]  }
  0x38   : > { %2449 = vmatprep.subr.bf16.mxu0 %v2688_v29  ;;  %736 = vmatmul.mubr.bf16.gmra.mxu1 %v443_v30  ;;  %v3206_v29 = vld [vmem:[%s2954_s6 + $0x24] ss:$16 sps:$4 sm:$0x1f]   ;;  %v1050_v30 = vld [vmem:[%s2954_s6 + $0x8] sm:$0xcc] }
  0x39   : > { %2476 = vmatpush3.bf16.msra.mxu1 %v2687_v28  ;;  %1033 = vmatprep.mubr.bf16.mxu1 %v2981_v42  ;;  %v2697_v42 = vld [vmem:[%s3357_s1 + $0xd0] sm:$0xff]   ;;  %v2244_v28 = vcombine.high %v1049_v25, %v2964_v33  ;;  %v1181_v33 = vshrl.u32 %v3206_v29, 16  ;;  %v2763_v25 = vld [vmem:[%s3357_s1 + $0x3e8] sm:$0xff]  }
  0x3a   : > { %2477 = vmatprep.subr.bf16.mxu1 %v2689_v31  ;;  %v2754_v31 = vld [vmem:[%s3357_s1 + $0x378] sm:$0xff]  }
  0x3b   : > { %2450 = vmatpush3.bf16.msra.mxu0 %v2690_v32  ;;  %v1173_v32 = vshrl.u32 %v2244_v28, 16 }
  0x3c   : > { %2451 = vmatprep.subr.bf16.mxu0 %v2692_v36  ;;  %v2246_v36 = vcombine.high %v1050_v30, %v2972_v38 }
  0x3d   : > { %2478 = vmatpush3.bf16.msra.mxu1 %v2691_v34  ;;  %v1176_v34 = vshll.u32 %v2244_v28, 16  ;;  %v2765_v28 = vld [vmem:[%s3357_s1 + $0x3a8] sm:$0xff]  }
  0x3e   : > { %2479 = vmatprep.subr.bf16.mxu1 %v2693_v37  ;;  %v3214_v37 = vld [vmem:[%s2954_s6 + $0x20] ss:$16 sps:$4 sm:$0x1f]  }
  0x3f   : > { %2452 = vmatpush3.bf16.msra.mxu0 %v2694_v39  ;;  %v1184_v39 = vshll.u32 %v3206_v29, 16  ;;  %v1167_v62 = vshll.u32 %v3214_v37, 16 }
  0x40   : > { %2453 = vmatprep.subr.bf16.mxu0 %v2696_v41  ;;  %v1175_v41 = vrot.slane %v1173_v32, 2  ;;  %v2770_v32 = vld [vmem:[%s3357_s1 + $0x358] sm:$0xff]  }
  0x41   : > { %2480 = vmatpush3.bf16.msra.mxu1 %v2695_v35  ;;  %v1156_v35 = vshrl.u32 %v2243_v27, 16 }
  0x42   : > { %2481 = vmatprep.subr.bf16.mxu1 %v2697_v42  ;;  %v1178_v42 = vrot.slane %v1176_v34, 3  ;;  %v2769_v34 = vld [vmem:[%s3357_s1 + $0x3a0] sm:$0xff]  }
  0x43   : > { %2454 = vmatpush3.bf16.msra.mxu0 %v2698_v43  ;;  %v2245_v43 = vcombine.low %v1050_v30, %v2972_v38  ;;  %v2767_v30 = vld [vmem:[%s3357_s1 + $0x3e0] sm:$0xff]  }
  0x44   : > { %2455 = vmatprep.subr.bf16.mxu0 %v2700_v46  ;;  %v1207_v46 = vshrl.u32 %v2246_v36, 16 }
  0x45   : > { %2482 = vmatpush3.bf16.msra.mxu1 %v2699_v45  ;;  %v3220_v45 = vld [vmem:[%s2954_s6 + $0x2c] ss:$16 sps:$4 sm:$0x1f]  }
  0x46   : > { %2483 = vmatprep.subr.bf16.mxu1 %v2701_v47  ;;  %v1183_v47 = vrot.slane %v1181_v33, 2  ;;  %v2772_v33 = vld [vmem:[%s3357_s1 + $0x318] sm:$0xff]  }
  0x47   : > { %2456 = vmatpush3.bf16.msra.mxu0 %v2702_v48  ;;  %v1186_v48 = vrot.slane %v1184_v39, 3  ;;  %v2774_v39 = vld [vmem:[%s3357_s1 + $0x350] sm:$0xff]  }
  0x48   : > { %2457 = vmatprep.subr.bf16.mxu0 %v2704_v50  ;;  %v1210_v50 = vshll.u32 %v2246_v36, 16  ;;  %v2771_v36 = vld [vmem:[%s3357_s1 + $0x3d8] sm:$0xff]  }
  0x49   : > { %2484 = vmatpush3.bf16.msra.mxu1 %v2703_v49  ;;  %v3223_v49 = vld [vmem:[%s2954_s6 + $0x28] ss:$16 sps:$4 sm:$0x1f]   ;;  %v1187_v38 = vor.u32 %v1186_v48, %v1183_v47 }
  0x4a   : > { %2485 = vmatprep.subr.bf16.mxu1 %v2705_v51  ;;  %v1158_v51 = vrot.slane %v1156_v35, 2  ;;  %v2773_v35 = vld [vmem:[%s3357_s1 + $0x398] sm:$0xff]   ;;  %v2779_v47 = vld [vmem:[%s3357_s1 + $0x3c8] sm:$0xff]  }
  0x4b   : > { %2458 = vmatpush3.bf16.msra.mxu0 %v2706_v52  ;;  %v1179_v52 = vor.u32 %v1178_v42, %v1175_v41  ;;  %v2775_v41 = vld [vmem:[%s3357_s1 + $0x3d0] sm:$0xff]   ;;  %v2780_v48 = vld [vmem:[%s3357_s1 + $0x308] sm:$0xff]  }
  0x4c   : > { %2499 = vmatprep.subr.bf16.mxu0 %v2708_v54  ;;  %v1215_v54 = vshrl.u32 %v3220_v45, 16  ;;  %v2776_v42 = vld [vmem:[%s3357_s1 + $0x310] sm:$0xff]  }
  0x4d   : > { %2486 = vmatpush3.bf16.msra.mxu1 %v2707_v53  ;;  %v1209_v53 = vrot.slane %v1207_v46, 2  ;;  %v2777_v46 = vld [vmem:[%s3357_s1 + $0x390] sm:$0xff]  }
  0x4e   : > { %986 = vmatmul.mubr.bf16.vlgmr.msra.gmra.mxu0 %v2976_v40  ;;  %2527 = vmatprep.subr.bf16.mxu1 %v2709_v55  ;;  %v2719_v40 = vld [vmem:[%s3357_s1 + $0x2e8] sm:$0xff]   ;;  %v1218_v55 = vshll.u32 %v3220_v45, 16 }
  0x4f   : > { %2500 = vmatpush3.bf16.msra.mxu0 %v2710_v56  ;;  %993 = vmatprep.mubr.bf16.mxu0 %v2144_v63  ;;  %v2755_v56 = vld [vmem:[%s3357_s1 + $0x3f8] sm:$0xff]   ;;  %v1190_v63 = vshrl.u32 %v2245_v43, 16 }
  0x50   : > { %1034 = vmatmul.mubr.bf16.vlgmr.msra.gmra.mxu1 %v2984_v44  ;;  %2501 = vmatprep.subr.bf16.mxu0 %v2712_v58  ;;  %v2721_v44 = vld [vmem:[%s3357_s1 + $0x228] sm:$0xff]   ;;  %v1159_v58 = vshll.u32 %v2243_v27, 16  ;;  %v2766_v27 = vld [vmem:[%s3357_s1 + $0x360] sm:$0xff]  }
  0x51   : > { %2528 = vmatpush3.bf16.msra.mxu1 %v2711_v57  ;;  %1041 = vmatprep.mubr.bf16.mxu1 %v2146_v3  ;;  %v1212_v57 = vrot.slane %v1210_v50, 3  ;;  %v2782_v50 = vld [vmem:[%s3357_s1 + $0x340] sm:$0xff]  }
  0x52   : > { %2529 = vmatprep.subr.bf16.mxu1 %v2713_v59  ;;  %v1164_v59 = vshrl.u32 %v3214_v37, 16 }
  0x53   : > { %2502 = vmatpush3.bf16.msra.mxu0 %v2714_v60  ;;  %v1217_v60 = vrot.slane %v1215_v54, 2  ;;  %v1523_v54 = vld [vmem:[%s2954_s6 + $0x8] sm:$0x88] }
  0x54   : > { %2503 = vmatprep.subr.bf16.mxu0 %v2718_v0  ;;  %v1188_v0 = vsel %vm1154_vm1, %v1179_v52, %v1187_v38  ;;  %v1166_v2 = vrot.slane %v1164_v59, 2  ;;  %v1522_v52 = vld [vmem:[%s2954_s6] sm:$0x88]  ;;  %v2791_v59 = vld [vmem:[%s2954_s6 + $0x18] sm:$0xff] }
  0x55   : > { %2530 = vmatpush3.bf16.msra.mxu1 %v2715_v61  ;;  %v1220_v61 = vrot.slane %v1218_v55, 3  ;;  %v2783_v55 = vld [vmem:[%s3357_s1 + $0x3c0] sm:$0xff]  }
  0x56   : > { %994 = vmatmul.mubr.bf16.gmra.mxu0 %v2143_v1  ;;  %2531 = vmatprep.subr.bf16.mxu1 %v2719_v40  ;;  %v1213_v40 = vor.u32 %v1212_v57, %v1209_v53  ;;  %v1161_v1 = vrot.slane %v1159_v58, 3  ;;  %v1604_v53 = vrot.slane %v3206_v29, 3  ;;  %v2350_v29 = vcombine.high %v1523_v54, %v2791_v59 }
  0x57   : > { %2504 = vmatpush3.bf16.msra.mxu0 %v2721_v44  ;;  %1455 = vmatprep.mubr.bf16.mxu0 %v1188_v0  ;;  %v1221_v3 = vor.u32 %v1220_v61, %v1217_v60  ;;  %v1169_v44 = vrot.slane %v1167_v62, 3  ;;  %v2349_v60 = vcombine.low %v1523_v54, %v2791_v59  ;;  %v1601_v61 = vrot.slane %v3214_v37, 3 }
  0x58   : > { %1042 = vmatmul.mubr.bf16.gmra.mxu1 %v2145_v5  ;;  %2505 = vmatprep.subr.bf16.mxu0 %v2724_v6  ;;  %v1193_v5 = vshll.u32 %v2245_v43, 16  ;;  %v1162_v6 = vor.u32 %v1161_v1, %v1158_v51  ;;  %v2778_v43 = vld [vmem:[%s3357_s1 + $0x348] sm:$0xff]   ;;  %v1610_v62 = vrot.slane %v3220_v45, 3 }
  0x59   : > { %2532 = vmatpush3.bf16.msra.mxu1 %v2722_v4  ;;  %v1192_v4 = vrot.slane %v1190_v63, 2  ;;  %v2781_v51 = vld [vmem:[%s3357_s1 + $0x388] sm:$0xff]   ;;  %v1606_v1 = vrot.slane %v2349_v60, 3 }
  0x5a   : > { %2533 = vmatprep.subr.bf16.mxu1 %v2725_v7  ;;  %v1198_v7 = vshrl.u32 %v3223_v49, 16 }
  0x5b   : > { %2506 = vmatpush3.bf16.msra.mxu0 %v2726_v8  ;;  %v1201_v8 = vshll.u32 %v3223_v49, 16 }
  0x5c   : > { %2507 = vmatprep.subr.bf16.mxu0 %v2728_v10  ;;  %v1170_v10 = vor.u32 %v1169_v44, %v1166_v2  ;;  %v1609_v2 = vrot.slane %v2350_v29, 3 }
  0x5d   : > { %2534 = vmatpush3.bf16.msra.mxu1 %v2727_v9  ;;  %v1222_v9 = vsel %vm1154_vm1, %v1213_v40, %v1221_v3  ;;  %v2785_v40 = vld [vmem:[%s3357_s1 + $0x380] sm:$0xff]  }
  0x5e   : > { %2535 = vmatprep.subr.bf16.mxu1 %v2729_v11  ;;  %v1195_v11 = vrot.slane %v1193_v5, 3  ;;  %1503 = vmatprep.mubr.bf16.mxu1 %v1222_v9  ;;  %v1611_v45 = vsel %vm1599_vm2, %v1609_v2, %v1610_v62 }
  0x5f   : > { %2508 = vmatpush3.bf16.msra.mxu0 %v2730_v12  ;;  %v2756_v12 = vld [vmem:[%s3357_s1 + $0x338] sm:$0xff]  }
  0x60   : > { %2509 = vmatprep.subr.bf16.mxu0 %v2732_v14  ;;  %v1203_v14 = vrot.slane %v1201_v8, 3 }
  0x61   : > { %2536 = vmatpush3.bf16.msra.mxu1 %v2731_v13  ;;  %v1200_v13 = vrot.slane %v1198_v7, 2 }
  0x62   : > { %2537 = vmatprep.subr.bf16.mxu1 %v2733_v15  ;;  %v2757_v15 = vld [vmem:[%s3357_s1 + $0x3b8] sm:$0xff]  }
  0x63   : > { %2510 = vmatpush3.bf16.msra.mxu0 %v2734_v16  ;;  %v2758_v16 = vld [vmem:[%s3357_s1 + $0x370] sm:$0xff]  }
  0x64   : > { %2511 = vmatprep.subr.bf16.mxu0 %v2736_v18  ;;  %v1196_v18 = vor.u32 %v1195_v11, %v1192_v4 }
  0x65   : > { %2538 = vmatpush3.bf16.msra.mxu1 %v2735_v17  ;;  %v1171_v17 = vsel %vm1154_vm1, %v1162_v6, %v1170_v10 }
  0x66   : > { %2539 = vmatprep.subr.bf16.mxu1 %v2737_v19  ;;  %v1204_v19 = vor.u32 %v1203_v14, %v1200_v13 }
  0x67   : > { %2512 = vmatpush3.bf16.msra.mxu0 %v2738_v20  ;;  %v2759_v20 = vld [vmem:[%s3357_s1 + $0x3f0] sm:$0xff]  }
  0x68   : > { %2513 = vmatprep.subr.bf16.mxu0 %v2740_v22  ;;  %v1205_v22 = vsel %vm1154_vm1, %v1196_v18, %v1204_v19 }
  0x69   : > { %2540 = vmatpush3.bf16.msra.mxu1 %v2739_v21  ;;  %v2760_v21 = vld [vmem:[%s3357_s1 + $0x330] sm:$0xff]  }
  0x6a   : > { %2541 = vmatprep.subr.bf16.mxu1 %v2741_v23  ;;  %v2762_v23 = vld [vmem:[%s3357_s1 + $0x368] sm:$0xff]  }
  0x6b   : > { %2514 = vmatpush3.bf16.msra.mxu0 %v2742_v24  ;;  %v2761_v24 = vld [vmem:[%s3357_s1 + $0x3b0] sm:$0xff]  }
  0x6c   : > { %2555 = vmatprep.subr.bf16.mxu0 %v2754_v31  ;;  %v2768_v31 = vld [vmem:[%s3357_s1 + $0x320] sm:$0xff]  }
  0x6d   : > { %2542 = vmatpush3.bf16.msra.mxu1 %v2743_v26  ;;  %v2764_v26 = vld [vmem:[%s3357_s1 + $0x328] sm:$0xff]  }
  0x6e   : > { %2583 = vmatprep.subr.bf16.mxu1 %v2755_v56  ;;  %1456 = vmatmul.mubr.bf16.vlgmr.msra.gmra.mxu0 %v1171_v17  ;;  %v2784_v56 = vld [vmem:[%s3357_s1 + $0x300] sm:$0xff]  }
  0x6f   : > { %2556 = vmatpush3.bf16.msra.mxu0 %v2756_v12  ;;  %1463 = vmatprep.mubr.bf16.mxu0 %v1187_v38  ;;  %v2790_v38 = vld [vmem:[%s2954_s6 + $0x10] sm:$0xff]  ;;  %s2611_s6 = smul.u32 24, %s3365_s12 }
  0x70   : > { %2557 = vmatprep.subr.bf16.mxu0 %v2758_v16  ;;  %1504 = vmatmul.mubr.bf16.vlgmr.msra.gmra.mxu1 %v1205_v22  ;;  %v2347_v57 = vcombine.low %v1522_v52, %v2790_v38  ;;  %v2348_v58 = vcombine.high %v1522_v52, %v2790_v38 }
  0x71   : > { %2584 = vmatpush3.bf16.msra.mxu1 %v2757_v15  ;;  %1511 = vmatprep.mubr.bf16.mxu1 %v1221_v3  ;;  %v1607_v3 = vrot.slane %v3223_v49, 3  ;;  %s221_s9 = scalar_lea.vmem %s3359_s3, %s2611_s6 }
  0x72   : > { %2585 = vmatprep.subr.bf16.mxu1 %v2759_v20  ;;  %v1600_v63 = vrot.slane %v2347_v57, 3  ;;  %v1603_v0 = vrot.slane %v2348_v58, 3 }
  0x73   : > { %2558 = vmatpush3.bf16.msra.mxu0 %v2760_v21  ;;  %v1608_v4 = vsel %vm1599_vm2, %v1606_v1, %v1607_v3 }
  0x74   : > { %2559 = vmatprep.subr.bf16.mxu0 %v2762_v23  ;;  %v1605_v37 = vsel %vm1599_vm2, %v1603_v0, %v1604_v53  ;;  %v1602_v44 = vsel %vm1599_vm2, %v1600_v63, %v1601_v61 }
  0x75   : > { %2586 = vmatpush3.bf16.msra.mxu1 %v2761_v24 }
  0x76   : > { %1464 = vmatmul.mubr.bf16.gmra.mxu0 %v1170_v10  ;;  %2587 = vmatprep.subr.bf16.mxu1 %v2763_v25 }
  0x77   : > { %2560 = vmatpush3.bf16.msra.mxu0 %v2764_v26  ;;  %1844 = vmatprep.mubr.bf16.mxu0 %v1605_v37 }
  0x78   : > { %2561 = vmatprep.subr.bf16.mxu0 %v2766_v27  ;;  %1512 = vmatmul.mubr.bf16.gmra.mxu1 %v1204_v19 }
  0x79   : > { %2588 = vmatpush3.bf16.msra.mxu1 %v2765_v28  ;;  %1892 = vmatprep.mubr.bf16.mxu1 %v1611_v45 }
  0x7a   : > { %2589 = vmatprep.subr.bf16.mxu1 %v2767_v30 }
  0x7b   : > { %2562 = vmatpush3.bf16.msra.mxu0 %v2768_v31 }
  0x7c   : > { %2563 = vmatprep.subr.bf16.mxu0 %v2770_v32 }
  0x7d   : > { %2590 = vmatpush3.bf16.msra.mxu1 %v2769_v34 }
  0x7e   : > { %2591 = vmatprep.subr.bf16.mxu1 %v2771_v36 }
  0x7f   : > { %2564 = vmatpush3.bf16.msra.mxu0 %v2772_v33 }
  0x80   : > { %2565 = vmatprep.subr.bf16.mxu0 %v2774_v39 }
  0x81   : > { %2592 = vmatpush3.bf16.msra.mxu1 %v2773_v35 }
  0x82   : > { %2593 = vmatprep.subr.bf16.mxu1 %v2775_v41 }
  0x83   : > { %2566 = vmatpush3.bf16.msra.mxu0 %v2776_v42 }
  0x84   : > { %2567 = vmatprep.subr.bf16.mxu0 %v2778_v43 }
  0x85   : > { %2594 = vmatpush3.bf16.msra.mxu1 %v2777_v46 }
  0x86   : > { %2595 = vmatprep.subr.bf16.mxu1 %v2779_v47 }
  0x87   : > { %2568 = vmatpush3.bf16.msra.mxu0 %v2780_v48 }
  0x88   : > { %2569 = vmatprep.subr.bf16.mxu0 %v2782_v50 }
  0x89   : > { %2596 = vmatpush3.bf16.msra.mxu1 %v2781_v51 }
  0x8a   : > { %2597 = vmatprep.subr.bf16.mxu1 %v2783_v55 }
  0x8b   : > { %2570 = vmatpush3.bf16.msra.mxu0 %v2784_v56 }
  0x8d   : > { %2598 = vmatpush3.bf16.msra.mxu1 %v2785_v40 }
  0x8e   : > { %1845 = vmatmul.mubr.bf16.vlgmr.msra.gmra.mxu0 %v1602_v44 }
  0x8f   : > { %1852 = vmatprep.mubr.bf16.mxu0 %v1604_v53 }
  0x90   : > { %1893 = vmatmul.mubr.bf16.vlgmr.msra.gmra.mxu1 %v1608_v4 }
  0x91   : > { %1900 = vmatprep.mubr.bf16.mxu1 %v1610_v62 }
  0x96   : > { %1853 = vmatmul.mubr.bf16.gmra.mxu0 %v1601_v61 }
  0x98   : > { %1901 = vmatmul.mubr.bf16.gmra.mxu1 %v1607_v3 }
  0xee   : > { %v2403_v49 = vpop.f32.mrf.mxu0 }
  0xef   : > { %v2431_v5 = vpop.f32.mrf.mxu1 }
  0xf0   : > { %v2404_v6 = vpop.f32.mrf.mxu0 }
  0xf1   : > { %v2405_v7 = vadd.f32 %v2404_v6, %v2403_v49  ;;  %v2432_v8 = vpop.f32.mrf.mxu1 }
  0xf2   : > { %v2406_v9 = vpop.f32.mrf.mxu0  ;;  %v2433_v10 = vadd.f32 %v2432_v8, %v2431_v5 }
  0xf3   : > { %v2434_v11 = vpop.f32.mrf.mxu1 }
  0xf4   : > { %v2407_v12 = vpop.f32.mrf.mxu0  ;;  %v730_v13 = vadd.f32 %v2433_v10, %v2405_v7 }
  0xf5   : > { %v2408_v14 = vadd.f32 %v2407_v12, %v2406_v9  ;;  %v2435_v15 = vpop.f32.mrf.mxu1 }
  0xf6   : > { %v2409_v16 = vpop.f32.mrf.mxu0  ;;  %v2436_v17 = vadd.f32 %v2435_v15, %v2434_v11 }
  0xf8   : > { %v2437_v18 = vpop.f32.mrf.mxu1  ;;  %v2410_v19 = vpop.f32.mrf.mxu0  ;;  %v733_v20 = vadd.f32 %v2436_v17, %v2408_v14 }
  0xf9   : > { %v2411_v21 = vadd.f32 %v2410_v19, %v2409_v16 }
  0xfa   : > { %v2438_v22 = vpop.f32.mrf.mxu1  ;;  %v2412_v23 = vpop.f32.mrf.mxu0 }
  0xfb   : > { %v2439_v24 = vadd.f32 %v2438_v22, %v2437_v18 }
  0xfc   : > { %v2440_v25 = vpop.f32.mrf.mxu1  ;;  %v2413_v26 = vpop.f32.mrf.mxu0 }
  0xfd   : > { %v738_v27 = vadd.f32 %v2439_v24, %v2411_v21 }
  0xfe   : > { %v2441_v28 = vpop.f32.mrf.mxu1 }
 0x10e   : > { %v2459_v30 = vpop.f32.mrf.mxu0 }
 0x110   : > { %v2487_v31 = vpop.f32.mrf.mxu1  ;;  %v2460_v32 = vpop.f32.mrf.mxu0 }
 0x111   : > { %v2461_v34 = vadd.f32 %v2460_v32, %v2459_v30 }
 0x112   : > { %v2488_v36 = vpop.f32.mrf.mxu1  ;;  %v2462_v33 = vpop.f32.mrf.mxu0 }
 0x113   : > { %v988_v39 = vadd.f32 %v2461_v34, %v730_v13  ;;  %v2489_v35 = vadd.f32 %v2488_v36, %v2487_v31  ;;  %v2383_v31 = vld [vmem:[%s3358_s2] ss:$0 sm:$0xff] }
 0x114   : > { %v2490_v41 = vpop.f32.mrf.mxu1  ;;  %v2463_v42 = vpop.f32.mrf.mxu0 }
 0x115   : > { %v1036_v43 = vadd.f32 %v2489_v35, %v988_v39  ;;  %v2464_v46 = vadd.f32 %v2463_v42, %v2462_v33 }
 0x116   : > { %v2491_v47 = vpop.f32.mrf.mxu1  ;;  %v2465_v48 = vpop.f32.mrf.mxu0 }
 0x117   : > { %v991_v50 = vadd.f32 %v2464_v46, %v733_v20  ;;  %v2492_v51 = vadd.f32 %v2491_v47, %v2490_v41 }
 0x118   : > { %v2466_v52 = vpop.f32.mrf.mxu0  ;;  %v2493_v53 = vpop.f32.mrf.mxu1 }
 0x119   : > { %v1039_v54 = vadd.f32 %v2492_v51, %v991_v50  ;;  %v2467_v55 = vadd.f32 %v2466_v52, %v2465_v48 }
 0x11a   : > { %v2494_v56 = vpop.f32.mrf.mxu1  ;;  %v2468_v38 = vpop.f32.mrf.mxu0 }
 0x11b   : > { %v996_v57 = vadd.f32 %v2467_v55, %v738_v27  ;;  %v2495_v58 = vadd.f32 %v2494_v56, %v2493_v53 }
 0x11c   : > { %v2496_v59 = vpop.f32.mrf.mxu1  ;;  %v2469_v60 = vpop.f32.mrf.mxu0 }
 0x11d   : > { %v1044_v61 = vadd.f32 %v2495_v58, %v996_v57 }
 0x11e   : > { %v2497_v29 = vpop.f32.mrf.mxu1 }
 0x12e   : > { %v2515_v62 = vpop.f32.mrf.mxu0 }
 0x130   : > { %v2516_v63 = vpop.f32.mrf.mxu0  ;;  %v2543_v0 = vpop.f32.mrf.mxu1 }
 0x131   : > { %v2517_v9 = vadd.f32 %v2516_v63, %v2515_v62 }
 0x132   : > { %v2518_v40 = vpop.f32.mrf.mxu0  ;;  %v2544_v1 = vpop.f32.mrf.mxu1 }
 0x133   : > { %v2545_v10 = vadd.f32 %v2544_v1, %v2543_v0 }
 0x134   : > { %v2519_v2 = vpop.f32.mrf.mxu0  ;;  %v2546_v3 = vpop.f32.mrf.mxu1 }
 0x135   : > { %v1506_v13 = vadd.f32 %v2545_v10, %v2517_v9  ;;  %v2520_v14 = vadd.f32 %v2519_v2, %v2518_v40 }
 0x136   : > { %v2521_v37 = vpop.f32.mrf.mxu0  ;;  %v2547_v44 = vpop.f32.mrf.mxu1 }
 0x137   : > { %v2548_v15 = vadd.f32 %v2547_v44, %v2546_v3  ;;  %v1519_v22 = vadd.f32 %v1506_v13, %v1036_v43 }
 0x138   : > { %v2522_v45 = vpop.f32.mrf.mxu0  ;;  %v2549_v4 = vpop.f32.mrf.mxu1 }
 0x139   : > { %v1509_v23 = vadd.f32 %v2548_v15, %v2520_v14  ;;  %v2523_v25 = vadd.f32 %v2522_v45, %v2521_v37 }
 0x13a   : > { %v2524_v49 = vpop.f32.mrf.mxu0  ;;  %v2550_v5 = vpop.f32.mrf.mxu1 }
 0x13b   : > { %v2551_v26 = vadd.f32 %v2550_v5, %v2549_v4  ;;  %v1520_v39 = vadd.f32 %v1509_v23, %v1039_v54 }
 0x13c   : > { %v2525_v6 = vpop.f32.mrf.mxu0  ;;  %v2552_v7 = vpop.f32.mrf.mxu1 }
 0x13d   : > { %v1514_v41 = vadd.f32 %v2551_v26, %v2523_v25 }
 0x13e   : > { %v2553_v8 = vpop.f32.mrf.mxu1 }
 0x13f   : > { %v1521_v55 = vadd.f32 %v1514_v41, %v1044_v61 }
 0x14e   : > { %v2571_v11 = vpop.f32.mrf.mxu0 }
 0x150   : > { %v2572_v12 = vpop.f32.mrf.mxu0  ;;  %v2599_v16 = vpop.f32.mrf.mxu1 }
 0x151   : > { %v2573_v17 = vadd.f32 %v2572_v12, %v2571_v11 }
 0x152   : > { %v2574_v18 = vpop.f32.mrf.mxu0  ;;  %v2600_v19 = vpop.f32.mrf.mxu1 }
 0x153   : > { %v2601_v20 = vadd.f32 %v2600_v19, %v2599_v16 }
 0x154   : > { %v2575_v21 = vpop.f32.mrf.mxu0  ;;  %v2602_v24 = vpop.f32.mrf.mxu1 }
 0x155   : > { %v1895_v27 = vadd.f32 %v2601_v20, %v2573_v17  ;;  %v2576_v28 = vadd.f32 %v2575_v21, %v2574_v18 }
 0x156   : > { %v2577_v30 = vpop.f32.mrf.mxu0  ;;  %v2603_v32 = vpop.f32.mrf.mxu1 }
 0x157   : > { %v1908_v34 = vadd.f32 %v1895_v27, %v1519_v22  ;;  %v2604_v36 = vadd.f32 %v2603_v32, %v2602_v24 }
 0x158   : > { %v2578_v33 = vpop.f32.mrf.mxu0  ;;  %v2605_v35 = vpop.f32.mrf.mxu1 }
 0x159   : > { %v1918_v42 = vadd.f32 %v2383_v31, %v1908_v34  ;;  %v1898_v43 = vadd.f32 %v2604_v36, %v2576_v28  ;;  %v2579_v46 = vadd.f32 %v2578_v33, %v2577_v30 }
 0x15a   : > { %v2580_v47 = vpop.f32.mrf.mxu0  ;;  %v2606_v48 = vpop.f32.mrf.mxu1 }
 0x15b   : > { %1921 = vst [vmem:[%s221_s9] sm:$0xff] %v1918_v42  ;;  %v1909_v50 = vadd.f32 %v1898_v43, %v1520_v39  ;;  %v2607_v51 = vadd.f32 %v2606_v48, %v2605_v35 }
 0x15c   : > { %v2581_v52 = vpop.f32.mrf.mxu0  ;;  %v2608_v53 = vpop.f32.mrf.mxu1 }
 0x15d   : > { %v1919_v56 = vadd.f32 %v2383_v31, %v1909_v50  ;;  %v1903_v38 = vadd.f32 %v2607_v51, %v2579_v46 }
 0x15e   : > { %v2609_v54 = vpop.f32.mrf.mxu1 }
 0x15f   : > { %1922 = vst [vmem:[%s221_s9 + $0x8] sm:$0xff] %v1919_v56  ;;  %v1910_v57 = vadd.f32 %v1903_v38, %v1521_v55 }
 0x161   : > { %v1920_v58 = vadd.f32 %v2383_v31, %v1910_v57 }
 0x163   : > { %1923 = vst [vmem:[%s221_s9 + $0x10] sm:$0xf] %v1920_v58 }
 0x164 PF: > { %s13_s14 = sadd.s32 1, %s2814_s14   ;;  %s3360_s12 = smov %s2810_s13 }
 0x165   : > { %p10_p5 = scmp.ge.s32.totalorder %s13_s14, 4   ;;  %s3361_s13 = smov %s3363_s15 }
 0x167   :  { %12 = sbr.rel (!%p10_p5) target bundleno = 2 (0x2), region = 71 }

</bundles_post_ra>
